<compile_context>
chip_gen: v5e
topology: v5e:2x2
jax: 0.10.0
libtpu: 0.0.40
codegen_flags: <defaults>
</compile_context>

<pallas_src>
import functools
import numpy as np
import jax
import jax.numpy as jnp
from jax.experimental import pallas as pl
from jax.experimental.pallas import tpu as pltpu


# ----------------------------------------------------------------------------
# Config (small, deterministic shapes implied by the module's forward)
# ----------------------------------------------------------------------------
CFG = dict(out_size=16, hidden_size=32, num_layers=2, dropout_rate=0.1)
BATCH = 2
SEQ = 8


def _round_up(n, m):
    return ((n + m - 1) // m) * m


# ----------------------------------------------------------------------------
# Pallas kernel: full LSTM recurrence + final Linear on the last timestep
# ----------------------------------------------------------------------------
def _lstm_decoder_kernel(num_layers, seq_len, hidden_size, batch_p, w_offsets,
                         fc_row_off, x_ref, w_ref, b_ref, out_ref, hs_scratch):
    """Single-program LSTM decoder (everything resident in VMEM).

    x_ref      : (T*Bp, D_in) bf16  time-major, batch padded to Bp (8-aligned)
    w_ref      : (ROWS, 4H)   bf16  [wihT_0; whhT_0; ...; wihT_{L-1}; whhT_{L-1}; wfcT(pad)]
    b_ref      : (L+1, 4H)    f32   [b_0; ...; b_{L-1}; bfc(pad)], b_l = b_ih + b_hh
    out_ref    : (Bp, 4H)     f32   lane-dense; wrapper slices [:B, :out_size]
    hs_scratch : (T*Bp, H)    bf16  per-step hidden states feeding the next layer
    Gate column order in the packed weights/biases is [i, f, o | g].
    """
    H = hidden_size
    T = seq_len
    Bp = batch_p

    h_bf = None
    for layer in range(num_layers):
        wih_off, wih_rows, whh_off = w_offsets[layer]
        wihT = w_ref[wih_off:wih_off + wih_rows, :]      # (d_in, 4H) bf16
        whhT = w_ref[whh_off:whh_off + H, :]             # (H,   4H) bf16
        bias = b_ref[layer:layer + 1, :]                 # (1,   4H) f32

        # ---- Hoisted input projection for ALL timesteps (one MXU matmul) ----
        if layer == 0:
            x_all = x_ref[...]                           # (T*Bp, D_in) bf16
        else:
            x_all = hs_scratch[...]                      # (T*Bp, H)    bf16
        gpre = (jnp.dot(x_all, wihT, preferred_element_type=jnp.float32)
                + bias)                                  # (T*Bp, 4H) f32, bias folded once

        # ---- Sequential recurrence: one small matmul + trimmed EUP per step --
        h = jnp.zeros((Bp, H), dtype=jnp.float32)
        c = jnp.zeros((Bp, H), dtype=jnp.float32)
        h_bf = h.astype(jnp.bfloat16)
        for t in range(T):                               # T small & static: unrolled
            gates = (gpre[t * Bp:(t + 1) * Bp, :]
                     + jnp.dot(h_bf, whhT, preferred_element_type=jnp.float32))
            sig = jax.nn.sigmoid(gates[:, :3 * H])       # [i, f, o] lanes only
            g_g = jnp.tanh(gates[:, 3 * H:4 * H])        # tanh only on the g slice
            i_g = sig[:, 0 * H:1 * H]
            f_g = sig[:, 1 * H:2 * H]
            o_g = sig[:, 2 * H:3 * H]
            c = f_g * c + i_g * g_g
            h = o_g * jnp.tanh(c)
            h_bf = h.astype(jnp.bfloat16)
            if layer < num_layers - 1:
                hs_scratch[t * Bp:(t + 1) * Bp, :] = h_bf  # off the critical path

    # Dropout is identity in eval / inference mode.
    # TODO(synk): training-mode dropout (random mask between layers / on outputs) omitted.
    wfcT = w_ref[fc_row_off:fc_row_off + H, :]           # (H, 4H) bf16, zero-padded lanes
    bfc = b_ref[num_layers:num_layers + 1, :]            # (1, 4H) f32,  zero-padded lanes
    out_ref[...] = (jnp.dot(h_bf, wfcT, preferred_element_type=jnp.float32)
                    + bfc).astype(out_ref.dtype)


# ----------------------------------------------------------------------------
# Parameter packing: raw PyTorch-layout params -> 2 contiguous buffers
# ----------------------------------------------------------------------------
def pack_params(params, cfg):
    H = cfg['hidden_size']
    L = cfg['num_layers']
    D = cfg['out_size']
    G = 4 * H
    assert D <= G, "packed lane width assumes out_size <= 4*hidden_size"

    # Gate column reorder: PyTorch [i, f, g, o] -> packed [i, f, o, g]
    perm = np.concatenate([np.arange(0, H), np.arange(H, 2 * H),
                           np.arange(3 * H, 4 * H), np.arange(2 * H, 3 * H)])

    w_blocks, b_rows, w_offsets = [], [], []
    row = 0
    for l in range(L):
        d_in = D if l == 0 else H
        w_ih = params[f'w_ih_{l}'][perm, :]                    # (4H, d_in)
        w_hh = params[f'w_hh_{l}'][perm, :]                    # (4H, H)
        b = (params[f'b_ih_{l}'] + params[f'b_hh_{l}'])[perm]  # (4H,)

        wihT = jnp.pad(w_ih.T, ((0, _round_up(d_in, 8) - d_in), (0, 0)))
        whhT = jnp.pad(w_hh.T, ((0, _round_up(H, 8) - H), (0, 0)))
        wih_off = row; row += wihT.shape[0]
        whh_off = row; row += whhT.shape[0]
        w_offsets.append((wih_off, d_in, whh_off))
        w_blocks += [wihT, whhT]
        b_rows.append(b.reshape(1, G))

    wfcT = jnp.pad(params['w_fc'].T,
                   ((0, _round_up(H, 8) - H), (0, G - D)))     # (H_pad, 4H)
    fc_row_off = row; row += wfcT.shape[0]
    w_blocks.append(wfcT)
    b_rows.append(jnp.pad(params['b_fc'].reshape(1, D), ((0, 0), (0, G - D))))

    w_packed = jnp.concatenate(w_blocks, axis=0).astype(jnp.bfloat16)  # (ROWS, 4H)
    b_packed = jnp.concatenate(b_rows, axis=0).astype(jnp.float32)     # (L+1, 4H)
    return w_packed, b_packed, tuple(w_offsets), fc_row_off


# ----------------------------------------------------------------------------
# Wrapper
# ----------------------------------------------------------------------------
def lstm_decoder_forward(x, params, cfg):
    """x: (B, T, out_size) float32. params: raw PyTorch-layout weights."""
    B, T, D = x.shape
    H = cfg['hidden_size']
    L = cfg['num_layers']
    D_out = cfg['out_size']
    G = 4 * H
    Bp = _round_up(B, 8)

    w_packed, b_packed, w_offsets, fc_off = pack_params(params, cfg)

    # Time-major, batch padded, collapsed to 2-D in XLA-land, cast to bf16:
    # the kernel receives one clean (T*Bp, D) slab (single DMA, no relayout).
    x_tb = jnp.transpose(x, (1, 0, 2))                        # (T, B, D)
    x_pad = jnp.pad(x_tb, ((0, 0), (0, Bp - B), (0, 0)))      # (T, Bp, D)
    x2d = x_pad.reshape(T * Bp, D).astype(jnp.bfloat16)       # (T*Bp, D)

    kernel = functools.partial(_lstm_decoder_kernel, L, T, H, Bp,
                               w_offsets, fc_off)

    vmem = pl.BlockSpec(memory_space=pltpu.MemorySpace.VMEM)
    out_pad = pl.pallas_call(
        kernel,
        out_shape=jax.ShapeDtypeStruct((Bp, G), jnp.float32),
        in_specs=[vmem, vmem, vmem],
        out_specs=vmem,
        scratch_shapes=[pltpu.VMEM((T * Bp, H), jnp.bfloat16)],
    )(x2d, w_packed, b_packed)
    return out_pad[:B, :D_out]


# ----------------------------------------------------------------------------
# Deterministic parameter init (PyTorch-style U(-1/sqrt(H), 1/sqrt(H)),
# PyTorch gate order [i, f, g, o])
# ----------------------------------------------------------------------------
def init_params(key, cfg):
    H = cfg['hidden_size']
    L = cfg['num_layers']
    D = cfg['out_size']
    k = 1.0 / np.sqrt(H)
    params = {}
    for l in range(L):
        d_in = D if l == 0 else H
        key, k1, k2, k3, k4 = jax.random.split(key, 5)
        params[f'w_ih_{l}'] = jax.random.uniform(k1, (4 * H, d_in), jnp.float32, -k, k)
        params[f'w_hh_{l}'] = jax.random.uniform(k2, (4 * H, H), jnp.float32, -k, k)
        params[f'b_ih_{l}'] = jax.random.uniform(k3, (4 * H,), jnp.float32, -k, k)
        params[f'b_hh_{l}'] = jax.random.uniform(k4, (4 * H,), jnp.float32, -k, k)
    key, k5, k6 = jax.random.split(key, 3)
    params['w_fc'] = jax.random.uniform(k5, (D, H), jnp.float32, -k, k)
    params['b_fc'] = jax.random.uniform(k6, (D,), jnp.float32, -k, k)
    return params


# ----------------------------------------------------------------------------
# Pure-JAX reference (f32, PyTorch layout & gate order) for correctness check
# ----------------------------------------------------------------------------
def reference_forward(x, params, cfg):
    H = cfg['hidden_size']
    L = cfg['num_layers']
    B, T, _ = x.shape
    cur = x
    for l in range(L):
        w_ih = params[f'w_ih_{l}']
        w_hh = params[f'w_hh_{l}']
        b = params[f'b_ih_{l}'] + params[f'b_hh_{l}']
        h = jnp.zeros((B, H), jnp.float32)
        c = jnp.zeros((B, H), jnp.float32)
        outs = []
        for t in range(T):
            gates = cur[:, t, :] @ w_ih.T + h @ w_hh.T + b
            i = jax.nn.sigmoid(gates[:, 0 * H:1 * H])
            f = jax.nn.sigmoid(gates[:, 1 * H:2 * H])
            g = jnp.tanh(gates[:, 2 * H:3 * H])
            o = jax.nn.sigmoid(gates[:, 3 * H:4 * H])
            c = f * c + i * g
            h = o * jnp.tanh(c)
            outs.append(h)
        cur = jnp.stack(outs, axis=1)
    return cur[:, -1, :] @ params['w_fc'].T + params['b_fc']


if __name__ == "__main__":
    key = jax.random.PRNGKey(0)
    key, pkey, xkey = jax.random.split(key, 3)

    params = init_params(pkey, CFG)
    x = jax.random.normal(xkey, (BATCH, SEQ, CFG['out_size']), jnp.float32)

    out = lstm_decoder_forward(x, params, CFG)
    out = jax.block_until_ready(out)

    ref = reference_forward(x, params, CFG)
    # bf16 MXU operands over a 16-step recurrence: loosened tolerance.
    np.testing.assert_allclose(np.asarray(out), np.asarray(ref), rtol=2e-2, atol=2e-2)

    assert out.shape == (BATCH, CFG['out_size'])
    print("KERNEL_OK")
</pallas_src>

<mosaic_0001>
module attributes {stable_mosaic.version = 11 : i64} {
  func.func @_lstm_decoder_kernel(%arg0: memref<64x16xbf16, #tpu.memory_space<vmem>>, %arg1: memref<144x128xbf16, #tpu.memory_space<vmem>>, %arg2: memref<3x128xf32, #tpu.memory_space<vmem>>, %arg3: memref<8x128xf32, #tpu.memory_space<vmem>>, %arg4: memref<64x32xbf16, #tpu.memory_space<vmem>>) attributes {dimension_semantics = [], scalar_prefetch = 0 : i64, scratch_operands = 1 : i64, tpu.core_type = #tpu.core_type<tc>} {
    %c0 = arith.constant 0 : index
    %c0_0 = arith.constant 0 : index
    %0 = vector.load %arg1[%c0, %c0_0] : memref<144x128xbf16, #tpu.memory_space<vmem>>, vector<16x128xbf16>
    %c16 = arith.constant 16 : index
    %c0_1 = arith.constant 0 : index
    %1 = vector.load %arg1[%c16, %c0_1] : memref<144x128xbf16, #tpu.memory_space<vmem>>, vector<32x128xbf16>
    %c0_2 = arith.constant 0 : index
    %c0_3 = arith.constant 0 : index
    %2 = vector.load %arg2[%c0_2, %c0_3] : memref<3x128xf32, #tpu.memory_space<vmem>>, vector<1x128xf32>
    %c0_4 = arith.constant 0 : index
    %c0_5 = arith.constant 0 : index
    %3 = vector.load %arg0[%c0_4, %c0_5] : memref<64x16xbf16, #tpu.memory_space<vmem>>, vector<64x16xbf16>
    %cst = arith.constant dense<0.000000e+00> : vector<64x128xf32>
    %4 = tpu.matmul %3, %0, %cst {dimension_numbers = #tpu.dot_dimension_numbers<[1], [0], [0], [1], [0, 0, 1, 1], [], []>} : vector<64x16xbf16>, vector<16x128xbf16>, vector<64x128xf32> -> vector<64x128xf32>
    %5 = vector.broadcast %2 : vector<1x128xf32> to vector<64x128xf32>
    %6 = arith.addf %4, %5 : vector<64x128xf32>
    %cst_6 = arith.constant 0.000000e+00 : f32
    %7 = vector.broadcast %cst_6 : f32 to vector<8x32xf32>
    %cst_7 = arith.constant 0.000000e+00 : f32
    %8 = vector.broadcast %cst_7 : f32 to vector<8x32xf32>
    %9 = arith.truncf %7 : vector<8x32xf32> to vector<8x32xbf16>
    %10 = vector.extract_strided_slice %6 {offsets = [0, 0], sizes = [8, 128], strides = [1, 1]} : vector<64x128xf32> to vector<8x128xf32>
    %cst_8 = arith.constant dense<0.000000e+00> : vector<8x128xf32>
    %11 = tpu.matmul %9, %1, %cst_8 {dimension_numbers = #tpu.dot_dimension_numbers<[1], [0], [0], [1], [0, 0, 1, 1], [], []>} : vector<8x32xbf16>, vector<32x128xbf16>, vector<8x128xf32> -> vector<8x128xf32>
    %12 = arith.addf %10, %11 : vector<8x128xf32>
    %13 = vector.extract_strided_slice %12 {offsets = [0, 0], sizes = [8, 96], strides = [1, 1]} : vector<8x128xf32> to vector<8x96xf32>
    %14 = arith.negf %13 : vector<8x96xf32>
    %15 = math.exp %14 : vector<8x96xf32>
    %cst_9 = arith.constant 1.000000e+00 : f32
    %16 = vector.broadcast %cst_9 : f32 to vector<8x96xf32>
    %17 = arith.addf %16, %15 : vector<8x96xf32>
    %18 = arith.divf %16, %17 : vector<8x96xf32>
    %19 = vector.extract_strided_slice %12 {offsets = [0, 96], sizes = [8, 32], strides = [1, 1]} : vector<8x128xf32> to vector<8x32xf32>
    %20 = math.tanh %19 : vector<8x32xf32>
    %21 = vector.extract_strided_slice %18 {offsets = [0, 0], sizes = [8, 32], strides = [1, 1]} : vector<8x96xf32> to vector<8x32xf32>
    %22 = vector.extract_strided_slice %18 {offsets = [0, 32], sizes = [8, 32], strides = [1, 1]} : vector<8x96xf32> to vector<8x32xf32>
    %23 = vector.extract_strided_slice %18 {offsets = [0, 64], sizes = [8, 32], strides = [1, 1]} : vector<8x96xf32> to vector<8x32xf32>
    %24 = arith.mulf %22, %8 : vector<8x32xf32>
    %25 = arith.mulf %21, %20 : vector<8x32xf32>
    %26 = arith.addf %24, %25 : vector<8x32xf32>
    %27 = math.tanh %26 : vector<8x32xf32>
    %28 = arith.mulf %23, %27 : vector<8x32xf32>
    %29 = arith.truncf %28 : vector<8x32xf32> to vector<8x32xbf16>
    %c0_10 = arith.constant 0 : index
    %c0_11 = arith.constant 0 : index
    %30 = vector.load %arg4[%c0_10, %c0_11] : memref<64x32xbf16, #tpu.memory_space<vmem>>, vector<8x32xbf16>
    tpu.vector_store %arg4[%c0_10, %c0_11], %29 {strides = array<i32>} : memref<64x32xbf16, #tpu.memory_space<vmem>>, vector<8x32xbf16>,
    %31 = vector.extract_strided_slice %6 {offsets = [8, 0], sizes = [8, 128], strides = [1, 1]} : vector<64x128xf32> to vector<8x128xf32>
    %cst_12 = arith.constant dense<0.000000e+00> : vector<8x128xf32>
    %32 = tpu.matmul %29, %1, %cst_12 {dimension_numbers = #tpu.dot_dimension_numbers<[1], [0], [0], [1], [0, 0, 1, 1], [], []>} : vector<8x32xbf16>, vector<32x128xbf16>, vector<8x128xf32> -> vector<8x128xf32>
    %33 = arith.addf %31, %32 : vector<8x128xf32>
    %34 = vector.extract_strided_slice %33 {offsets = [0, 0], sizes = [8, 96], strides = [1, 1]} : vector<8x128xf32> to vector<8x96xf32>
    %35 = arith.negf %34 : vector<8x96xf32>
    %36 = math.exp %35 : vector<8x96xf32>
    %cst_13 = arith.constant 1.000000e+00 : f32
    %37 = vector.broadcast %cst_13 : f32 to vector<8x96xf32>
    %38 = arith.addf %37, %36 : vector<8x96xf32>
    %39 = arith.divf %37, %38 : vector<8x96xf32>
    %40 = vector.extract_strided_slice %33 {offsets = [0, 96], sizes = [8, 32], strides = [1, 1]} : vector<8x128xf32> to vector<8x32xf32>
    %41 = math.tanh %40 : vector<8x32xf32>
    %42 = vector.extract_strided_slice %39 {offsets = [0, 0], sizes = [8, 32], strides = [1, 1]} : vector<8x96xf32> to vector<8x32xf32>
    %43 = vector.extract_strided_slice %39 {offsets = [0, 32], sizes = [8, 32], strides = [1, 1]} : vector<8x96xf32> to vector<8x32xf32>
    %44 = vector.extract_strided_slice %39 {offsets = [0, 64], sizes = [8, 32], strides = [1, 1]} : vector<8x96xf32> to vector<8x32xf32>
    %45 = arith.mulf %43, %26 : vector<8x32xf32>
    %46 = arith.mulf %42, %41 : vector<8x32xf32>
    %47 = arith.addf %45, %46 : vector<8x32xf32>
    %48 = math.tanh %47 : vector<8x32xf32>
    %49 = arith.mulf %44, %48 : vector<8x32xf32>
    %50 = arith.truncf %49 : vector<8x32xf32> to vector<8x32xbf16>
    %c8 = arith.constant 8 : index
    %c0_14 = arith.constant 0 : index
    %51 = vector.load %arg4[%c8, %c0_14] : memref<64x32xbf16, #tpu.memory_space<vmem>>, vector<8x32xbf16>
    tpu.vector_store %arg4[%c8, %c0_14], %50 {strides = array<i32>} : memref<64x32xbf16, #tpu.memory_space<vmem>>, vector<8x32xbf16>,
    %52 = vector.extract_strided_slice %6 {offsets = [16, 0], sizes = [8, 128], strides = [1, 1]} : vector<64x128xf32> to vector<8x128xf32>
    %cst_15 = arith.constant dense<0.000000e+00> : vector<8x128xf32>
    %53 = tpu.matmul %50, %1, %cst_15 {dimension_numbers = #tpu.dot_dimension_numbers<[1], [0], [0], [1], [0, 0, 1, 1], [], []>} : vector<8x32xbf16>, vector<32x128xbf16>, vector<8x128xf32> -> vector<8x128xf32>
    %54 = arith.addf %52, %53 : vector<8x128xf32>
    %55 = vector.extract_strided_slice %54 {offsets = [0, 0], sizes = [8, 96], strides = [1, 1]} : vector<8x128xf32> to vector<8x96xf32>
    %56 = arith.negf %55 : vector<8x96xf32>
    %57 = math.exp %56 : vector<8x96xf32>
    %cst_16 = arith.constant 1.000000e+00 : f32
    %58 = vector.broadcast %cst_16 : f32 to vector<8x96xf32>
    %59 = arith.addf %58, %57 : vector<8x96xf32>
    %60 = arith.divf %58, %59 : vector<8x96xf32>
    %61 = vector.extract_strided_slice %54 {offsets = [0, 96], sizes = [8, 32], strides = [1, 1]} : vector<8x128xf32> to vector<8x32xf32>
    %62 = math.tanh %61 : vector<8x32xf32>
    %63 = vector.extract_strided_slice %60 {offsets = [0, 0], sizes = [8, 32], strides = [1, 1]} : vector<8x96xf32> to vector<8x32xf32>
    %64 = vector.extract_strided_slice %60 {offsets = [0, 32], sizes = [8, 32], strides = [1, 1]} : vector<8x96xf32> to vector<8x32xf32>
    %65 = vector.extract_strided_slice %60 {offsets = [0, 64], sizes = [8, 32], strides = [1, 1]} : vector<8x96xf32> to vector<8x32xf32>
    %66 = arith.mulf %64, %47 : vector<8x32xf32>
    %67 = arith.mulf %63, %62 : vector<8x32xf32>
    %68 = arith.addf %66, %67 : vector<8x32xf32>
    %69 = math.tanh %68 : vector<8x32xf32>
    %70 = arith.mulf %65, %69 : vector<8x32xf32>
    %71 = arith.truncf %70 : vector<8x32xf32> to vector<8x32xbf16>
    %c16_17 = arith.constant 16 : index
    %c0_18 = arith.constant 0 : index
    %72 = vector.load %arg4[%c16_17, %c0_18] : memref<64x32xbf16, #tpu.memory_space<vmem>>, vector<8x32xbf16>
    tpu.vector_store %arg4[%c16_17, %c0_18], %71 {strides = array<i32>} : memref<64x32xbf16, #tpu.memory_space<vmem>>, vector<8x32xbf16>,
    %73 = vector.extract_strided_slice %6 {offsets = [24, 0], sizes = [8, 128], strides = [1, 1]} : vector<64x128xf32> to vector<8x128xf32>
    %cst_19 = arith.constant dense<0.000000e+00> : vector<8x128xf32>
    %74 = tpu.matmul %71, %1, %cst_19 {dimension_numbers = #tpu.dot_dimension_numbers<[1], [0], [0], [1], [0, 0, 1, 1], [], []>} : vector<8x32xbf16>, vector<32x128xbf16>, vector<8x128xf32> -> vector<8x128xf32>
    %75 = arith.addf %73, %74 : vector<8x128xf32>
    %76 = vector.extract_strided_slice %75 {offsets = [0, 0], sizes = [8, 96], strides = [1, 1]} : vector<8x128xf32> to vector<8x96xf32>
    %77 = arith.negf %76 : vector<8x96xf32>
    %78 = math.exp %77 : vector<8x96xf32>
    %cst_20 = arith.constant 1.000000e+00 : f32
    %79 = vector.broadcast %cst_20 : f32 to vector<8x96xf32>
    %80 = arith.addf %79, %78 : vector<8x96xf32>
    %81 = arith.divf %79, %80 : vector<8x96xf32>
    %82 = vector.extract_strided_slice %75 {offsets = [0, 96], sizes = [8, 32], strides = [1, 1]} : vector<8x128xf32> to vector<8x32xf32>
    %83 = math.tanh %82 : vector<8x32xf32>
    %84 = vector.extract_strided_slice %81 {offsets = [0, 0], sizes = [8, 32], strides = [1, 1]} : vector<8x96xf32> to vector<8x32xf32>
    %85 = vector.extract_strided_slice %81 {offsets = [0, 32], sizes = [8, 32], strides = [1, 1]} : vector<8x96xf32> to vector<8x32xf32>
    %86 = vector.extract_strided_slice %81 {offsets = [0, 64], sizes = [8, 32], strides = [1, 1]} : vector<8x96xf32> to vector<8x32xf32>
    %87 = arith.mulf %85, %68 : vector<8x32xf32>
    %88 = arith.mulf %84, %83 : vector<8x32xf32>
    %89 = arith.addf %87, %88 : vector<8x32xf32>
    %90 = math.tanh %89 : vector<8x32xf32>
    %91 = arith.mulf %86, %90 : vector<8x32xf32>
    %92 = arith.truncf %91 : vector<8x32xf32> to vector<8x32xbf16>
    %c24 = arith.constant 24 : index
    %c0_21 = arith.constant 0 : index
    %93 = vector.load %arg4[%c24, %c0_21] : memref<64x32xbf16, #tpu.memory_space<vmem>>, vector<8x32xbf16>
    tpu.vector_store %arg4[%c24, %c0_21], %92 {strides = array<i32>} : memref<64x32xbf16, #tpu.memory_space<vmem>>, vector<8x32xbf16>,
    %94 = vector.extract_strided_slice %6 {offsets = [32, 0], sizes = [8, 128], strides = [1, 1]} : vector<64x128xf32> to vector<8x128xf32>
    %cst_22 = arith.constant dense<0.000000e+00> : vector<8x128xf32>
    %95 = tpu.matmul %92, %1, %cst_22 {dimension_numbers = #tpu.dot_dimension_numbers<[1], [0], [0], [1], [0, 0, 1, 1], [], []>} : vector<8x32xbf16>, vector<32x128xbf16>, vector<8x128xf32> -> vector<8x128xf32>
    %96 = arith.addf %94, %95 : vector<8x128xf32>
    %97 = vector.extract_strided_slice %96 {offsets = [0, 0], sizes = [8, 96], strides = [1, 1]} : vector<8x128xf32> to vector<8x96xf32>
    %98 = arith.negf %97 : vector<8x96xf32>
    %99 = math.exp %98 : vector<8x96xf32>
    %cst_23 = arith.constant 1.000000e+00 : f32
    %100 = vector.broadcast %cst_23 : f32 to vector<8x96xf32>
    %101 = arith.addf %100, %99 : vector<8x96xf32>
    %102 = arith.divf %100, %101 : vector<8x96xf32>
    %103 = vector.extract_strided_slice %96 {offsets = [0, 96], sizes = [8, 32], strides = [1, 1]} : vector<8x128xf32> to vector<8x32xf32>
    %104 = math.tanh %103 : vector<8x32xf32>
    %105 = vector.extract_strided_slice %102 {offsets = [0, 0], sizes = [8, 32], strides = [1, 1]} : vector<8x96xf32> to vector<8x32xf32>
    %106 = vector.extract_strided_slice %102 {offsets = [0, 32], sizes = [8, 32], strides = [1, 1]} : vector<8x96xf32> to vector<8x32xf32>
    %107 = vector.extract_strided_slice %102 {offsets = [0, 64], sizes = [8, 32], strides = [1, 1]} : vector<8x96xf32> to vector<8x32xf32>
    %108 = arith.mulf %106, %89 : vector<8x32xf32>
    %109 = arith.mulf %105, %104 : vector<8x32xf32>
    %110 = arith.addf %108, %109 : vector<8x32xf32>
    %111 = math.tanh %110 : vector<8x32xf32>
    %112 = arith.mulf %107, %111 : vector<8x32xf32>
    %113 = arith.truncf %112 : vector<8x32xf32> to vector<8x32xbf16>
    %c32 = arith.constant 32 : index
    %c0_24 = arith.constant 0 : index
    %114 = vector.load %arg4[%c32, %c0_24] : memref<64x32xbf16, #tpu.memory_space<vmem>>, vector<8x32xbf16>
    tpu.vector_store %arg4[%c32, %c0_24], %113 {strides = array<i32>} : memref<64x32xbf16, #tpu.memory_space<vmem>>, vector<8x32xbf16>,
    %115 = vector.extract_strided_slice %6 {offsets = [40, 0], sizes = [8, 128], strides = [1, 1]} : vector<64x128xf32> to vector<8x128xf32>
    %cst_25 = arith.constant dense<0.000000e+00> : vector<8x128xf32>
    %116 = tpu.matmul %113, %1, %cst_25 {dimension_numbers = #tpu.dot_dimension_numbers<[1], [0], [0], [1], [0, 0, 1, 1], [], []>} : vector<8x32xbf16>, vector<32x128xbf16>, vector<8x128xf32> -> vector<8x128xf32>
    %117 = arith.addf %115, %116 : vector<8x128xf32>
    %118 = vector.extract_strided_slice %117 {offsets = [0, 0], sizes = [8, 96], strides = [1, 1]} : vector<8x128xf32> to vector<8x96xf32>
    %119 = arith.negf %118 : vector<8x96xf32>
    %120 = math.exp %119 : vector<8x96xf32>
    %cst_26 = arith.constant 1.000000e+00 : f32
    %121 = vector.broadcast %cst_26 : f32 to vector<8x96xf32>
    %122 = arith.addf %121, %120 : vector<8x96xf32>
    %123 = arith.divf %121, %122 : vector<8x96xf32>
    %124 = vector.extract_strided_slice %117 {offsets = [0, 96], sizes = [8, 32], strides = [1, 1]} : vector<8x128xf32> to vector<8x32xf32>
    %125 = math.tanh %124 : vector<8x32xf32>
    %126 = vector.extract_strided_slice %123 {offsets = [0, 0], sizes = [8, 32], strides = [1, 1]} : vector<8x96xf32> to vector<8x32xf32>
    %127 = vector.extract_strided_slice %123 {offsets = [0, 32], sizes = [8, 32], strides = [1, 1]} : vector<8x96xf32> to vector<8x32xf32>
    %128 = vector.extract_strided_slice %123 {offsets = [0, 64], sizes = [8, 32], strides = [1, 1]} : vector<8x96xf32> to vector<8x32xf32>
    %129 = arith.mulf %127, %110 : vector<8x32xf32>
    %130 = arith.mulf %126, %125 : vector<8x32xf32>
    %131 = arith.addf %129, %130 : vector<8x32xf32>
    %132 = math.tanh %131 : vector<8x32xf32>
    %133 = arith.mulf %128, %132 : vector<8x32xf32>
    %134 = arith.truncf %133 : vector<8x32xf32> to vector<8x32xbf16>
    %c40 = arith.constant 40 : index
    %c0_27 = arith.constant 0 : index
    %135 = vector.load %arg4[%c40, %c0_27] : memref<64x32xbf16, #tpu.memory_space<vmem>>, vector<8x32xbf16>
    tpu.vector_store %arg4[%c40, %c0_27], %134 {strides = array<i32>} : memref<64x32xbf16, #tpu.memory_space<vmem>>, vector<8x32xbf16>,
    %136 = vector.extract_strided_slice %6 {offsets = [48, 0], sizes = [8, 128], strides = [1, 1]} : vector<64x128xf32> to vector<8x128xf32>
    %cst_28 = arith.constant dense<0.000000e+00> : vector<8x128xf32>
    %137 = tpu.matmul %134, %1, %cst_28 {dimension_numbers = #tpu.dot_dimension_numbers<[1], [0], [0], [1], [0, 0, 1, 1], [], []>} : vector<8x32xbf16>, vector<32x128xbf16>, vector<8x128xf32> -> vector<8x128xf32>
    %138 = arith.addf %136, %137 : vector<8x128xf32>
    %139 = vector.extract_strided_slice %138 {offsets = [0, 0], sizes = [8, 96], strides = [1, 1]} : vector<8x128xf32> to vector<8x96xf32>
    %140 = arith.negf %139 : vector<8x96xf32>
    %141 = math.exp %140 : vector<8x96xf32>
    %cst_29 = arith.constant 1.000000e+00 : f32
    %142 = vector.broadcast %cst_29 : f32 to vector<8x96xf32>
    %143 = arith.addf %142, %141 : vector<8x96xf32>
    %144 = arith.divf %142, %143 : vector<8x96xf32>
    %145 = vector.extract_strided_slice %138 {offsets = [0, 96], sizes = [8, 32], strides = [1, 1]} : vector<8x128xf32> to vector<8x32xf32>
    %146 = math.tanh %145 : vector<8x32xf32>
    %147 = vector.extract_strided_slice %144 {offsets = [0, 0], sizes = [8, 32], strides = [1, 1]} : vector<8x96xf32> to vector<8x32xf32>
    %148 = vector.extract_strided_slice %144 {offsets = [0, 32], sizes = [8, 32], strides = [1, 1]} : vector<8x96xf32> to vector<8x32xf32>
    %149 = vector.extract_strided_slice %144 {offsets = [0, 64], sizes = [8, 32], strides = [1, 1]} : vector<8x96xf32> to vector<8x32xf32>
    %150 = arith.mulf %148, %131 : vector<8x32xf32>
    %151 = arith.mulf %147, %146 : vector<8x32xf32>
    %152 = arith.addf %150, %151 : vector<8x32xf32>
    %153 = math.tanh %152 : vector<8x32xf32>
    %154 = arith.mulf %149, %153 : vector<8x32xf32>
    %155 = arith.truncf %154 : vector<8x32xf32> to vector<8x32xbf16>
    %c48 = arith.constant 48 : index
    %c0_30 = arith.constant 0 : index
    %156 = vector.load %arg4[%c48, %c0_30] : memref<64x32xbf16, #tpu.memory_space<vmem>>, vector<8x32xbf16>
    tpu.vector_store %arg4[%c48, %c0_30], %155 {strides = array<i32>} : memref<64x32xbf16, #tpu.memory_space<vmem>>, vector<8x32xbf16>,
    %157 = vector.extract_strided_slice %6 {offsets = [56, 0], sizes = [8, 128], strides = [1, 1]} : vector<64x128xf32> to vector<8x128xf32>
    %cst_31 = arith.constant dense<0.000000e+00> : vector<8x128xf32>
    %158 = tpu.matmul %155, %1, %cst_31 {dimension_numbers = #tpu.dot_dimension_numbers<[1], [0], [0], [1], [0, 0, 1, 1], [], []>} : vector<8x32xbf16>, vector<32x128xbf16>, vector<8x128xf32> -> vector<8x128xf32>
    %159 = arith.addf %157, %158 : vector<8x128xf32>
    %160 = vector.extract_strided_slice %159 {offsets = [0, 0], sizes = [8, 96], strides = [1, 1]} : vector<8x128xf32> to vector<8x96xf32>
    %161 = arith.negf %160 : vector<8x96xf32>
    %162 = math.exp %161 : vector<8x96xf32>
    %cst_32 = arith.constant 1.000000e+00 : f32
    %163 = vector.broadcast %cst_32 : f32 to vector<8x96xf32>
    %164 = arith.addf %163, %162 : vector<8x96xf32>
    %165 = arith.divf %163, %164 : vector<8x96xf32>
    %166 = vector.extract_strided_slice %159 {offsets = [0, 96], sizes = [8, 32], strides = [1, 1]} : vector<8x128xf32> to vector<8x32xf32>
    %167 = math.tanh %166 : vector<8x32xf32>
    %168 = vector.extract_strided_slice %165 {offsets = [0, 0], sizes = [8, 32], strides = [1, 1]} : vector<8x96xf32> to vector<8x32xf32>
    %169 = vector.extract_strided_slice %165 {offsets = [0, 32], sizes = [8, 32], strides = [1, 1]} : vector<8x96xf32> to vector<8x32xf32>
    %170 = vector.extract_strided_slice %165 {offsets = [0, 64], sizes = [8, 32], strides = [1, 1]} : vector<8x96xf32> to vector<8x32xf32>
    %171 = arith.mulf %169, %152 : vector<8x32xf32>
    %172 = arith.mulf %168, %167 : vector<8x32xf32>
    %173 = arith.addf %171, %172 : vector<8x32xf32>
    %174 = math.tanh %173 : vector<8x32xf32>
    %175 = arith.mulf %170, %174 : vector<8x32xf32>
    %176 = arith.truncf %175 : vector<8x32xf32> to vector<8x32xbf16>
    %c56 = arith.constant 56 : index
    %c0_33 = arith.constant 0 : index
    %177 = vector.load %arg4[%c56, %c0_33] : memref<64x32xbf16, #tpu.memory_space<vmem>>, vector<8x32xbf16>
    tpu.vector_store %arg4[%c56, %c0_33], %176 {strides = array<i32>} : memref<64x32xbf16, #tpu.memory_space<vmem>>, vector<8x32xbf16>,
    %c48_34 = arith.constant 48 : index
    %c0_35 = arith.constant 0 : index
    %178 = vector.load %arg1[%c48_34, %c0_35] : memref<144x128xbf16, #tpu.memory_space<vmem>>, vector<32x128xbf16>
    %c80 = arith.constant 80 : index
    %c0_36 = arith.constant 0 : index
    %179 = vector.load %arg1[%c80, %c0_36] : memref<144x128xbf16, #tpu.memory_space<vmem>>, vector<32x128xbf16>
    %c1 = arith.constant 1 : index
    %c0_37 = arith.constant 0 : index
    %180 = vector.load %arg2[%c1, %c0_37] : memref<3x128xf32, #tpu.memory_space<vmem>>, vector<1x128xf32>
    %c0_38 = arith.constant 0 : index
    %c0_39 = arith.constant 0 : index
    %181 = vector.load %arg4[%c0_38, %c0_39] : memref<64x32xbf16, #tpu.memory_space<vmem>>, vector<64x32xbf16>
    %cst_40 = arith.constant dense<0.000000e+00> : vector<64x128xf32>
    %182 = tpu.matmul %181, %178, %cst_40 {dimension_numbers = #tpu.dot_dimension_numbers<[1], [0], [0], [1], [0, 0, 1, 1], [], []>} : vector<64x32xbf16>, vector<32x128xbf16>, vector<64x128xf32> -> vector<64x128xf32>
    %183 = vector.broadcast %180 : vector<1x128xf32> to vector<64x128xf32>
    %184 = arith.addf %182, %183 : vector<64x128xf32>
    %cst_41 = arith.constant 0.000000e+00 : f32
    %185 = vector.broadcast %cst_41 : f32 to vector<8x32xf32>
    %cst_42 = arith.constant 0.000000e+00 : f32
    %186 = vector.broadcast %cst_42 : f32 to vector<8x32xf32>
    %187 = arith.truncf %185 : vector<8x32xf32> to vector<8x32xbf16>
    %188 = vector.extract_strided_slice %184 {offsets = [0, 0], sizes = [8, 128], strides = [1, 1]} : vector<64x128xf32> to vector<8x128xf32>
    %cst_43 = arith.constant dense<0.000000e+00> : vector<8x128xf32>
    %189 = tpu.matmul %187, %179, %cst_43 {dimension_numbers = #tpu.dot_dimension_numbers<[1], [0], [0], [1], [0, 0, 1, 1], [], []>} : vector<8x32xbf16>, vector<32x128xbf16>, vector<8x128xf32> -> vector<8x128xf32>
    %190 = arith.addf %188, %189 : vector<8x128xf32>
    %191 = vector.extract_strided_slice %190 {offsets = [0, 0], sizes = [8, 96], strides = [1, 1]} : vector<8x128xf32> to vector<8x96xf32>
    %192 = arith.negf %191 : vector<8x96xf32>
    %193 = math.exp %192 : vector<8x96xf32>
    %cst_44 = arith.constant 1.000000e+00 : f32
    %194 = vector.broadcast %cst_44 : f32 to vector<8x96xf32>
    %195 = arith.addf %194, %193 : vector<8x96xf32>
    %196 = arith.divf %194, %195 : vector<8x96xf32>
    %197 = vector.extract_strided_slice %190 {offsets = [0, 96], sizes = [8, 32], strides = [1, 1]} : vector<8x128xf32> to vector<8x32xf32>
    %198 = math.tanh %197 : vector<8x32xf32>
    %199 = vector.extract_strided_slice %196 {offsets = [0, 0], sizes = [8, 32], strides = [1, 1]} : vector<8x96xf32> to vector<8x32xf32>
    %200 = vector.extract_strided_slice %196 {offsets = [0, 32], sizes = [8, 32], strides = [1, 1]} : vector<8x96xf32> to vector<8x32xf32>
    %201 = vector.extract_strided_slice %196 {offsets = [0, 64], sizes = [8, 32], strides = [1, 1]} : vector<8x96xf32> to vector<8x32xf32>
    %202 = arith.mulf %200, %186 : vector<8x32xf32>
    %203 = arith.mulf %199, %198 : vector<8x32xf32>
    %204 = arith.addf %202, %203 : vector<8x32xf32>
    %205 = math.tanh %204 : vector<8x32xf32>
    %206 = arith.mulf %201, %205 : vector<8x32xf32>
    %207 = arith.truncf %206 : vector<8x32xf32> to vector<8x32xbf16>
    %208 = vector.extract_strided_slice %184 {offsets = [8, 0], sizes = [8, 128], strides = [1, 1]} : vector<64x128xf32> to vector<8x128xf32>
    %cst_45 = arith.constant dense<0.000000e+00> : vector<8x128xf32>
    %209 = tpu.matmul %207, %179, %cst_45 {dimension_numbers = #tpu.dot_dimension_numbers<[1], [0], [0], [1], [0, 0, 1, 1], [], []>} : vector<8x32xbf16>, vector<32x128xbf16>, vector<8x128xf32> -> vector<8x128xf32>
    %210 = arith.addf %208, %209 : vector<8x128xf32>
    %211 = vector.extract_strided_slice %210 {offsets = [0, 0], sizes = [8, 96], strides = [1, 1]} : vector<8x128xf32> to vector<8x96xf32>
    %212 = arith.negf %211 : vector<8x96xf32>
    %213 = math.exp %212 : vector<8x96xf32>
    %cst_46 = arith.constant 1.000000e+00 : f32
    %214 = vector.broadcast %cst_46 : f32 to vector<8x96xf32>
    %215 = arith.addf %214, %213 : vector<8x96xf32>
    %216 = arith.divf %214, %215 : vector<8x96xf32>
    %217 = vector.extract_strided_slice %210 {offsets = [0, 96], sizes = [8, 32], strides = [1, 1]} : vector<8x128xf32> to vector<8x32xf32>
    %218 = math.tanh %217 : vector<8x32xf32>
    %219 = vector.extract_strided_slice %216 {offsets = [0, 0], sizes = [8, 32], strides = [1, 1]} : vector<8x96xf32> to vector<8x32xf32>
    %220 = vector.extract_strided_slice %216 {offsets = [0, 32], sizes = [8, 32], strides = [1, 1]} : vector<8x96xf32> to vector<8x32xf32>
    %221 = vector.extract_strided_slice %216 {offsets = [0, 64], sizes = [8, 32], strides = [1, 1]} : vector<8x96xf32> to vector<8x32xf32>
    %222 = arith.mulf %220, %204 : vector<8x32xf32>
    %223 = arith.mulf %219, %218 : vector<8x32xf32>
    %224 = arith.addf %222, %223 : vector<8x32xf32>
    %225 = math.tanh %224 : vector<8x32xf32>
    %226 = arith.mulf %221, %225 : vector<8x32xf32>
    %227 = arith.truncf %226 : vector<8x32xf32> to vector<8x32xbf16>
    %228 = vector.extract_strided_slice %184 {offsets = [16, 0], sizes = [8, 128], strides = [1, 1]} : vector<64x128xf32> to vector<8x128xf32>
    %cst_47 = arith.constant dense<0.000000e+00> : vector<8x128xf32>
    %229 = tpu.matmul %227, %179, %cst_47 {dimension_numbers = #tpu.dot_dimension_numbers<[1], [0], [0], [1], [0, 0, 1, 1], [], []>} : vector<8x32xbf16>, vector<32x128xbf16>, vector<8x128xf32> -> vector<8x128xf32>
    %230 = arith.addf %228, %229 : vector<8x128xf32>
    %231 = vector.extract_strided_slice %230 {offsets = [0, 0], sizes = [8, 96], strides = [1, 1]} : vector<8x128xf32> to vector<8x96xf32>
    %232 = arith.negf %231 : vector<8x96xf32>
    %233 = math.exp %232 : vector<8x96xf32>
    %cst_48 = arith.constant 1.000000e+00 : f32
    %234 = vector.broadcast %cst_48 : f32 to vector<8x96xf32>
    %235 = arith.addf %234, %233 : vector<8x96xf32>
    %236 = arith.divf %234, %235 : vector<8x96xf32>
    %237 = vector.extract_strided_slice %230 {offsets = [0, 96], sizes = [8, 32], strides = [1, 1]} : vector<8x128xf32> to vector<8x32xf32>
    %238 = math.tanh %237 : vector<8x32xf32>
    %239 = vector.extract_strided_slice %236 {offsets = [0, 0], sizes = [8, 32], strides = [1, 1]} : vector<8x96xf32> to vector<8x32xf32>
    %240 = vector.extract_strided_slice %236 {offsets = [0, 32], sizes = [8, 32], strides = [1, 1]} : vector<8x96xf32> to vector<8x32xf32>
    %241 = vector.extract_strided_slice %236 {offsets = [0, 64], sizes = [8, 32], strides = [1, 1]} : vector<8x96xf32> to vector<8x32xf32>
    %242 = arith.mulf %240, %224 : vector<8x32xf32>
    %243 = arith.mulf %239, %238 : vector<8x32xf32>
    %244 = arith.addf %242, %243 : vector<8x32xf32>
    %245 = math.tanh %244 : vector<8x32xf32>
    %246 = arith.mulf %241, %245 : vector<8x32xf32>
    %247 = arith.truncf %246 : vector<8x32xf32> to vector<8x32xbf16>
    %248 = vector.extract_strided_slice %184 {offsets = [24, 0], sizes = [8, 128], strides = [1, 1]} : vector<64x128xf32> to vector<8x128xf32>
    %cst_49 = arith.constant dense<0.000000e+00> : vector<8x128xf32>
    %249 = tpu.matmul %247, %179, %cst_49 {dimension_numbers = #tpu.dot_dimension_numbers<[1], [0], [0], [1], [0, 0, 1, 1], [], []>} : vector<8x32xbf16>, vector<32x128xbf16>, vector<8x128xf32> -> vector<8x128xf32>
    %250 = arith.addf %248, %249 : vector<8x128xf32>
    %251 = vector.extract_strided_slice %250 {offsets = [0, 0], sizes = [8, 96], strides = [1, 1]} : vector<8x128xf32> to vector<8x96xf32>
    %252 = arith.negf %251 : vector<8x96xf32>
    %253 = math.exp %252 : vector<8x96xf32>
    %cst_50 = arith.constant 1.000000e+00 : f32
    %254 = vector.broadcast %cst_50 : f32 to vector<8x96xf32>
    %255 = arith.addf %254, %253 : vector<8x96xf32>
    %256 = arith.divf %254, %255 : vector<8x96xf32>
    %257 = vector.extract_strided_slice %250 {offsets = [0, 96], sizes = [8, 32], strides = [1, 1]} : vector<8x128xf32> to vector<8x32xf32>
    %258 = math.tanh %257 : vector<8x32xf32>
    %259 = vector.extract_strided_slice %256 {offsets = [0, 0], sizes = [8, 32], strides = [1, 1]} : vector<8x96xf32> to vector<8x32xf32>
    %260 = vector.extract_strided_slice %256 {offsets = [0, 32], sizes = [8, 32], strides = [1, 1]} : vector<8x96xf32> to vector<8x32xf32>
    %261 = vector.extract_strided_slice %256 {offsets = [0, 64], sizes = [8, 32], strides = [1, 1]} : vector<8x96xf32> to vector<8x32xf32>
    %262 = arith.mulf %260, %244 : vector<8x32xf32>
    %263 = arith.mulf %259, %258 : vector<8x32xf32>
    %264 = arith.addf %262, %263 : vector<8x32xf32>
    %265 = math.tanh %264 : vector<8x32xf32>
    %266 = arith.mulf %261, %265 : vector<8x32xf32>
    %267 = arith.truncf %266 : vector<8x32xf32> to vector<8x32xbf16>
    %268 = vector.extract_strided_slice %184 {offsets = [32, 0], sizes = [8, 128], strides = [1, 1]} : vector<64x128xf32> to vector<8x128xf32>
    %cst_51 = arith.constant dense<0.000000e+00> : vector<8x128xf32>
    %269 = tpu.matmul %267, %179, %cst_51 {dimension_numbers = #tpu.dot_dimension_numbers<[1], [0], [0], [1], [0, 0, 1, 1], [], []>} : vector<8x32xbf16>, vector<32x128xbf16>, vector<8x128xf32> -> vector<8x128xf32>
    %270 = arith.addf %268, %269 : vector<8x128xf32>
    %271 = vector.extract_strided_slice %270 {offsets = [0, 0], sizes = [8, 96], strides = [1, 1]} : vector<8x128xf32> to vector<8x96xf32>
    %272 = arith.negf %271 : vector<8x96xf32>
    %273 = math.exp %272 : vector<8x96xf32>
    %cst_52 = arith.constant 1.000000e+00 : f32
    %274 = vector.broadcast %cst_52 : f32 to vector<8x96xf32>
    %275 = arith.addf %274, %273 : vector<8x96xf32>
    %276 = arith.divf %274, %275 : vector<8x96xf32>
    %277 = vector.extract_strided_slice %270 {offsets = [0, 96], sizes = [8, 32], strides = [1, 1]} : vector<8x128xf32> to vector<8x32xf32>
    %278 = math.tanh %277 : vector<8x32xf32>
    %279 = vector.extract_strided_slice %276 {offsets = [0, 0], sizes = [8, 32], strides = [1, 1]} : vector<8x96xf32> to vector<8x32xf32>
    %280 = vector.extract_strided_slice %276 {offsets = [0, 32], sizes = [8, 32], strides = [1, 1]} : vector<8x96xf32> to vector<8x32xf32>
    %281 = vector.extract_strided_slice %276 {offsets = [0, 64], sizes = [8, 32], strides = [1, 1]} : vector<8x96xf32> to vector<8x32xf32>
    %282 = arith.mulf %280, %264 : vector<8x32xf32>
    %283 = arith.mulf %279, %278 : vector<8x32xf32>
    %284 = arith.addf %282, %283 : vector<8x32xf32>
    %285 = math.tanh %284 : vector<8x32xf32>
    %286 = arith.mulf %281, %285 : vector<8x32xf32>
    %287 = arith.truncf %286 : vector<8x32xf32> to vector<8x32xbf16>
    %288 = vector.extract_strided_slice %184 {offsets = [40, 0], sizes = [8, 128], strides = [1, 1]} : vector<64x128xf32> to vector<8x128xf32>
    %cst_53 = arith.constant dense<0.000000e+00> : vector<8x128xf32>
    %289 = tpu.matmul %287, %179, %cst_53 {dimension_numbers = #tpu.dot_dimension_numbers<[1], [0], [0], [1], [0, 0, 1, 1], [], []>} : vector<8x32xbf16>, vector<32x128xbf16>, vector<8x128xf32> -> vector<8x128xf32>
    %290 = arith.addf %288, %289 : vector<8x128xf32>
    %291 = vector.extract_strided_slice %290 {offsets = [0, 0], sizes = [8, 96], strides = [1, 1]} : vector<8x128xf32> to vector<8x96xf32>
    %292 = arith.negf %291 : vector<8x96xf32>
    %293 = math.exp %292 : vector<8x96xf32>
    %cst_54 = arith.constant 1.000000e+00 : f32
    %294 = vector.broadcast %cst_54 : f32 to vector<8x96xf32>
    %295 = arith.addf %294, %293 : vector<8x96xf32>
    %296 = arith.divf %294, %295 : vector<8x96xf32>
    %297 = vector.extract_strided_slice %290 {offsets = [0, 96], sizes = [8, 32], strides = [1, 1]} : vector<8x128xf32> to vector<8x32xf32>
    %298 = math.tanh %297 : vector<8x32xf32>
    %299 = vector.extract_strided_slice %296 {offsets = [0, 0], sizes = [8, 32], strides = [1, 1]} : vector<8x96xf32> to vector<8x32xf32>
    %300 = vector.extract_strided_slice %296 {offsets = [0, 32], sizes = [8, 32], strides = [1, 1]} : vector<8x96xf32> to vector<8x32xf32>
    %301 = vector.extract_strided_slice %296 {offsets = [0, 64], sizes = [8, 32], strides = [1, 1]} : vector<8x96xf32> to vector<8x32xf32>
    %302 = arith.mulf %300, %284 : vector<8x32xf32>
    %303 = arith.mulf %299, %298 : vector<8x32xf32>
    %304 = arith.addf %302, %303 : vector<8x32xf32>
    %305 = math.tanh %304 : vector<8x32xf32>
    %306 = arith.mulf %301, %305 : vector<8x32xf32>
    %307 = arith.truncf %306 : vector<8x32xf32> to vector<8x32xbf16>
    %308 = vector.extract_strided_slice %184 {offsets = [48, 0], sizes = [8, 128], strides = [1, 1]} : vector<64x128xf32> to vector<8x128xf32>
    %cst_55 = arith.constant dense<0.000000e+00> : vector<8x128xf32>
    %309 = tpu.matmul %307, %179, %cst_55 {dimension_numbers = #tpu.dot_dimension_numbers<[1], [0], [0], [1], [0, 0, 1, 1], [], []>} : vector<8x32xbf16>, vector<32x128xbf16>, vector<8x128xf32> -> vector<8x128xf32>
    %310 = arith.addf %308, %309 : vector<8x128xf32>
    %311 = vector.extract_strided_slice %310 {offsets = [0, 0], sizes = [8, 96], strides = [1, 1]} : vector<8x128xf32> to vector<8x96xf32>
    %312 = arith.negf %311 : vector<8x96xf32>
    %313 = math.exp %312 : vector<8x96xf32>
    %cst_56 = arith.constant 1.000000e+00 : f32
    %314 = vector.broadcast %cst_56 : f32 to vector<8x96xf32>
    %315 = arith.addf %314, %313 : vector<8x96xf32>
    %316 = arith.divf %314, %315 : vector<8x96xf32>
    %317 = vector.extract_strided_slice %310 {offsets = [0, 96], sizes = [8, 32], strides = [1, 1]} : vector<8x128xf32> to vector<8x32xf32>
    %318 = math.tanh %317 : vector<8x32xf32>
    %319 = vector.extract_strided_slice %316 {offsets = [0, 0], sizes = [8, 32], strides = [1, 1]} : vector<8x96xf32> to vector<8x32xf32>
    %320 = vector.extract_strided_slice %316 {offsets = [0, 32], sizes = [8, 32], strides = [1, 1]} : vector<8x96xf32> to vector<8x32xf32>
    %321 = vector.extract_strided_slice %316 {offsets = [0, 64], sizes = [8, 32], strides = [1, 1]} : vector<8x96xf32> to vector<8x32xf32>
    %322 = arith.mulf %320, %304 : vector<8x32xf32>
    %323 = arith.mulf %319, %318 : vector<8x32xf32>
    %324 = arith.addf %322, %323 : vector<8x32xf32>
    %325 = math.tanh %324 : vector<8x32xf32>
    %326 = arith.mulf %321, %325 : vector<8x32xf32>
    %327 = arith.truncf %326 : vector<8x32xf32> to vector<8x32xbf16>
    %328 = vector.extract_strided_slice %184 {offsets = [56, 0], sizes = [8, 128], strides = [1, 1]} : vector<64x128xf32> to vector<8x128xf32>
    %cst_57 = arith.constant dense<0.000000e+00> : vector<8x128xf32>
    %329 = tpu.matmul %327, %179, %cst_57 {dimension_numbers = #tpu.dot_dimension_numbers<[1], [0], [0], [1], [0, 0, 1, 1], [], []>} : vector<8x32xbf16>, vector<32x128xbf16>, vector<8x128xf32> -> vector<8x128xf32>
    %330 = arith.addf %328, %329 : vector<8x128xf32>
    %331 = vector.extract_strided_slice %330 {offsets = [0, 0], sizes = [8, 96], strides = [1, 1]} : vector<8x128xf32> to vector<8x96xf32>
    %332 = arith.negf %331 : vector<8x96xf32>
    %333 = math.exp %332 : vector<8x96xf32>
    %cst_58 = arith.constant 1.000000e+00 : f32
    %334 = vector.broadcast %cst_58 : f32 to vector<8x96xf32>
    %335 = arith.addf %334, %333 : vector<8x96xf32>
    %336 = arith.divf %334, %335 : vector<8x96xf32>
    %337 = vector.extract_strided_slice %330 {offsets = [0, 96], sizes = [8, 32], strides = [1, 1]} : vector<8x128xf32> to vector<8x32xf32>
    %338 = math.tanh %337 : vector<8x32xf32>
    %339 = vector.extract_strided_slice %336 {offsets = [0, 0], sizes = [8, 32], strides = [1, 1]} : vector<8x96xf32> to vector<8x32xf32>
    %340 = vector.extract_strided_slice %336 {offsets = [0, 32], sizes = [8, 32], strides = [1, 1]} : vector<8x96xf32> to vector<8x32xf32>
    %341 = vector.extract_strided_slice %336 {offsets = [0, 64], sizes = [8, 32], strides = [1, 1]} : vector<8x96xf32> to vector<8x32xf32>
    %342 = arith.mulf %340, %324 : vector<8x32xf32>
    %343 = arith.mulf %339, %338 : vector<8x32xf32>
    %344 = arith.addf %342, %343 : vector<8x32xf32>
    %345 = math.tanh %344 : vector<8x32xf32>
    %346 = arith.mulf %341, %345 : vector<8x32xf32>
    %347 = arith.truncf %346 : vector<8x32xf32> to vector<8x32xbf16>
    %c112 = arith.constant 112 : index
    %c0_59 = arith.constant 0 : index
    %348 = vector.load %arg1[%c112, %c0_59] : memref<144x128xbf16, #tpu.memory_space<vmem>>, vector<32x128xbf16>
    %c2 = arith.constant 2 : index
    %c0_60 = arith.constant 0 : index
    %349 = vector.load %arg2[%c2, %c0_60] : memref<3x128xf32, #tpu.memory_space<vmem>>, vector<1x128xf32>
    %cst_61 = arith.constant dense<0.000000e+00> : vector<8x128xf32>
    %350 = tpu.matmul %347, %348, %cst_61 {dimension_numbers = #tpu.dot_dimension_numbers<[1], [0], [0], [1], [0, 0, 1, 1], [], []>} : vector<8x32xbf16>, vector<32x128xbf16>, vector<8x128xf32> -> vector<8x128xf32>
    %351 = vector.broadcast %349 : vector<1x128xf32> to vector<8x128xf32>
    %352 = arith.addf %350, %351 : vector<8x128xf32>
    %c0_62 = arith.constant 0 : index
    %c0_63 = arith.constant 0 : index
    %353 = vector.load %arg3[%c0_62, %c0_63] : memref<8x128xf32, #tpu.memory_space<vmem>>, vector<8x128xf32>
    tpu.vector_store %arg3[%c0_62, %c0_63], %352 {strides = array<i32>} : memref<8x128xf32, #tpu.memory_space<vmem>>, vector<8x128xf32>,
    return
  }
}

</mosaic_0001>

<bundles_post_ra>
// kernel: tpu_custom_call.1
= control target key start
LH: loop header
LB: loop body
LE: loop exit
PB: predicated region body
PF: predicated region fallthrough
CT: control target
= control target key end

     0   :  { %8 = vsyncpa [#allocation4], 0  ;;  %s1835_s0 = inlined_call_operand.vmem [shape: bf16[64,16], index: 0, kind: input, shape index: {}]   ;;  %s1836_s1 = inlined_call_operand.hbm [shape: bf16[144,128], index: 1, kind: input, shape index: {}]   ;;  %s1837_s2 = inlined_call_operand.vmem [shape: f32[3,128], index: 2, kind: input, shape index: {}]   ;;  %s1838_s3 = inlined_call_operand.hbm [shape: f32[8,128], index: 3, kind: output, shape index: {}]  }
   0x1   :  { %9 = vsyncpa [#allocation5], 0  ;;  %s16_s14 = sshll.u32 %s1836_s1, 4  ;;  %s1568_s15 = smov [#allocation3]   ;;  %s17_s14 = int_to_ptr.hbm [resolvable:$true] %s16_s14 }
   0x2   :  { %s18_s16 = sshll.u32 %s1568_s15, 4  ;;  %s1569_s17 = smov 64   ;;  %s19_s16 = int_to_ptr.vmem [resolvable:$true] %s18_s16 }
   0x3   :  { %s1570_s18 = smov 4  }
   0x4   :  { %24 = dma.hbm_to_vmem [thread:$0]  %s17_s14, 1152, %s19_s16, [#allocation4], %s1569_s17, %s1569_s17, %s1570_s18  }
   0x5   :  { %1564 = dma.done.wait [#allocation4], 1152  }
   0x6   :  { %1565 = vsyncadd [#allocation4], 4294966144  ;;  %v1361_v0 = vld [vmem:[#allocation3] sm:$0xff]  ;;  %v1599_v1 = vld [vmem:[#allocation3 + $0x10] sm:$0xff]  ;;  %vm74_vm0 = vcmask 130048   ;;  %v1571_v4 = vmov 0  }
   0x7   :  { %v1364_v2 = vld [vmem:[%s1835_s0] sm:$0xff]  ;;  %94 = vmatpush.bf16.msra.mxu0 %v1361_v0  ;;  %138 = vmatpush.bf16.msra.mxu1 %v1599_v1  ;;  %v1605_v3 = vld [vmem:[#allocation3 + $0x8] sm:$0xff]  ;;  %s1572_s22 = smov 32   ;;  %vm128_vm5 = vcmask 261120   ;;  %s1573_s7 = smov [#allocation6]  }
   0x8   :  { %203 = vmatpush.bf16.msra.mxu2 %v1599_v1  ;;  %267 = vmatpush.bf16.msra.mxu3 %v1599_v1  ;;  %v1625_v5 = vld [vmem:[%s1837_s2] ss:$0 sm:$0xff]  ;;  %v1365_v62 = vld [vmem:[%s1835_s0 + $0x8] sm:$0xff]  ;;  %s1242_s8 = sshll.u32 %s1573_s7, 4  ;;  %s1244_s11 = sshll.u32 %s1838_s3, 4  ;;  %s1243_s8 = int_to_ptr.vmem [resolvable:$true] %s1242_s8  ;;  %s1245_s11 = int_to_ptr.hbm [resolvable:$true] %s1244_s11 }
   0xa   :  { %1274 = vmatmul.msk.bf16.vlgmr.msra.gmra.mxu0 %vm74_vm0, %v1364_v2 }
   0xb   :  { %139 = vmatpush.bf16.msra.mxu1 %v1605_v3 }
   0xc   :  { %204 = vmatpush.bf16.msra.mxu2 %v1605_v3  ;;  %268 = vmatpush.bf16.msra.mxu3 %v1605_v3 }
   0xe   :  { %140 = vmatmul.bf16.vlgmr.msra.gmra.mxu1 %v1571_v4 }
   0xf   :  { %331 = vmatpush.bf16.msrb.mxu1 %v1599_v1 }
  0x10   :  { %395 = vmatpush.bf16.msrb.mxu2 %v1599_v1  ;;  %459 = vmatpush.bf16.msrb.mxu3 %v1599_v1 }
  0x13   :  { %332 = vmatpush.bf16.msrb.mxu1 %v1605_v3 }
  0x14   :  { %396 = vmatpush.bf16.msrb.mxu2 %v1605_v3  ;;  %460 = vmatpush.bf16.msrb.mxu3 %v1605_v3 }
  0x17   :  { %523 = vmatpush.bf16.msra.mxu1 %v1599_v1 }
  0x1a   :  { %1275 = vmatmul.msk.bf16.gmra.mxu0 %vm74_vm0, %v1365_v62 }
  0x1b   :  { %524 = vmatpush.bf16.msra.mxu1 %v1605_v3 }
  0x87   :  { %v96_v6 = vpop.f32.mrf.mxu0 }
  0x88   :  { %v97_v7 = vadd.f32 %v1625_v5, %v96_v6 }
  0x8b   :  { %v141_v8 = vpop.f32.mrf.mxu1 }
  0x8c   :  { %v145_v9 = vadd.f32 %v141_v8, %v97_v7 }
  0x8e   :  { %1387 = vtanh.f32 %v145_v9  ;;  %v1286_v12 = vmul.f32 -1.442695, %v145_v9 }
  0x8f   :  { %v98_v37 = vpop.f32.mrf.mxu0 }
  0x90   :  { %1389 = vpow2.f32 %v1286_v12  ;;  %v99_v38 = vadd.f32 %v1625_v5, %v98_v37 }
  0x93   :  { %v143_v10 = vpop.f32.mrf.mxu1 }
  0x94   :  { %v1388_v11 = vpop.eup %1387 }
  0x95   :  { %168 = vrot.lane.b32.xlu0 %v1388_v11, %s1572_s22 }
  0x96   :  { %v1390_v13 = vpop.eup %1389 }
  0x97   :  { %v149_v14 = vadd.f32 1.0, %v1390_v13  ;;  %v101_v7 = vpop.f32.mrf.mxu0 }
  0x98   :  { %v102_v8 = vadd.f32 %v1625_v5, %v101_v7 }
  0x99   :  { %1391 = vrcp.f32 %v149_v14  ;;  %v161_v20 = vand.u32 2147483648, %v149_v14  ;;  %vm155_vm2 = vweird.f32 %v149_v14  ;;  %v159_v21 = vand.u32 2147483647, %v149_v14 }
  0x9b   :  { %v162_v23 = vor.u32 1.1754944e-38, %v161_v20  ;;  %vm160_vm4 = vcmp.eq.f32.partialorder %v159_v21, 8.507059e+37 }
  0x9f   :  { %v1392_v15 = vpop.eup %1391 }
  0xa0   :  { %v151_v16 = vmul.f32 %v1392_v15, %v149_v14  ;;  %vm156_vm1 = vweird.f32 %v1392_v15 }
  0xa1   :  { %vm157_vm3 = vmor %vm155_vm2, %vm156_vm1 }
  0xa2   :  { %v152_v17 = vsub.f32 1.0, %v151_v16 }
  0xa4   :  { %v153_v18 = vmul.f32 %v1392_v15, %v152_v17 }
  0xa6   :  { %v154_v19 = vadd.f32 %v1392_v15, %v153_v18 }
  0xa8   :  { %v158_v22 = vsel %vm157_vm3, %v1392_v15, %v154_v19 }
  0xa9   :  { %v163_v25 = vsel %vm160_vm4, %v162_v23, %v158_v22 }
  0xaa   :  { %v166_v27 = vmul.f32 0.0, %v163_v25 }
 0x107   :  { %v169_v24 = vpop.permute.xlu0 %168 }
 0x108   :  { %v171_v26 = vmul.f32 %v169_v24, %v163_v25 }
 0x10a   :  { %173 = vrot.lane.b32.xlu0 %v171_v26, %s1572_s22 }
 0x17c   :  { %v174_v28 = vpop.permute.xlu0 %173 }
 0x17d   :  { %v176_v29 = vadd.f32 %v174_v28, %v166_v27 }
 0x17f   :  { %1393 = vtanh.f32 %v176_v29 }
 0x185   :  { %v1394_v30 = vpop.eup %1393 }
 0x186   :  { %179 = vrot.lane.b32.xlu1 %v1394_v30, %s1572_s22 }
 0x1f8   :  { %v180_v31 = vpop.permute.xlu1 %179 }
 0x1f9   :  { %v182_v32 = vmul.f32 %v180_v31, %v163_v25 }
 0x1fb   :  { %v1631_v33 = vpack.c.bf16 %v182_v32, %v182_v32 }
 0x1fd   :  { %v190_v34 = vunpack.c.l.b16 %v1631_v33 }
 0x1ff   :  { %v191_v35 = vpack.c.b16 %v190_v34, %v190_v34 }
 0x201   :  { %192 = vrot.lane.b32.xlu1 %v191_v35, %s1569_s17 }
 0x273   :  { %v193_v36 = vpop.permute.xlu1 %192 }
 0x274   :  { %1287 = vmatmul.msk.bf16.vlgmr.msra.gmra.mxu2 %vm128_vm5, %v193_v36 }
 0x275   :  { %587 = vmatpush.bf16.msra.mxu2 %v1599_v1 }
 0x279   :  { %588 = vmatpush.bf16.msra.mxu2 %v1605_v3 }
 0x2f7   :  { %v206_v39 = vpop.f32.mrf.mxu2 }
 0x2f8   :  { %v210_v40 = vadd.f32 %v206_v39, %v99_v38  ;;  %v103_v39 = vpop.f32.mrf.mxu0 }
 0x2fa   :  { %1395 = vtanh.f32 %v210_v40  ;;  %v1288_v43 = vmul.f32 -1.442695, %v210_v40  ;;  %v104_v40 = vadd.f32 %v1625_v5, %v103_v39 }
 0x2fc   :  { %1397 = vpow2.f32 %v1288_v43 }
 0x2ff   :  { %v208_v41 = vpop.f32.mrf.mxu2 }
 0x300   :  { %v1396_v42 = vpop.eup %1395 }
 0x301   :  { %233 = vrot.lane.b32.xlu2 %v1396_v42, %s1572_s22 }
 0x302   :  { %v1398_v44 = vpop.eup %1397 }
 0x303   :  { %v214_v45 = vadd.f32 1.0, %v1398_v44 }
 0x305   :  { %1399 = vrcp.f32 %v214_v45  ;;  %v226_v51 = vand.u32 2147483648, %v214_v45  ;;  %vm220_vm7 = vweird.f32 %v214_v45  ;;  %v224_v52 = vand.u32 2147483647, %v214_v45 }
 0x307   :  { %v227_v54 = vor.u32 1.1754944e-38, %v226_v51  ;;  %vm225_vm9 = vcmp.eq.f32.partialorder %v224_v52, 8.507059e+37 }
 0x30b   :  { %v1400_v46 = vpop.eup %1399 }
 0x30c   :  { %v216_v47 = vmul.f32 %v1400_v46, %v214_v45  ;;  %vm221_vm6 = vweird.f32 %v1400_v46 }
 0x30d   :  { %vm222_vm8 = vmor %vm220_vm7, %vm221_vm6 }
 0x30e   :  { %v217_v48 = vsub.f32 1.0, %v216_v47 }
 0x310   :  { %v218_v49 = vmul.f32 %v1400_v46, %v217_v48 }
 0x312   :  { %v219_v50 = vadd.f32 %v1400_v46, %v218_v49 }
 0x314   :  { %v223_v53 = vsel %vm222_vm8, %v1400_v46, %v219_v50 }
 0x315   :  { %v228_v56 = vsel %vm225_vm9, %v227_v54, %v223_v53 }
 0x316   :  { %v231_v58 = vmul.f32 %v228_v56, %v176_v29 }
 0x35b   :  { %v234_v55 = vpop.permute.xlu2 %233 }
 0x35c   :  { %v236_v57 = vmul.f32 %v234_v55, %v228_v56 }
 0x35e   :  { %238 = vrot.lane.b32.xlu2 %v236_v57, %s1572_s22 }
 0x3b8   :  { %v239_v59 = vpop.permute.xlu2 %238 }
 0x3b9   :  { %v241_v60 = vadd.f32 %v239_v59, %v231_v58 }
 0x3bb   :  { %1401 = vtanh.f32 %v241_v60 }
 0x3c1   :  { %v1402_v61 = vpop.eup %1401 }
 0x3c2   :  { %244 = vrot.lane.b32.xlu0 %v1402_v61, %s1572_s22 }
 0x434   :  { %v245_v63 = vpop.permute.xlu0 %244 }
 0x435   :  { %v247_v0 = vmul.f32 %v245_v63, %v228_v56 }
 0x437   :  { %v1646_v1 = vpack.c.bf16 %v247_v0, %v247_v0  ;;  %v1366_v0 = vld [vmem:[%s1835_s0 + $0x10] sm:$0xff] }
 0x438   :  { %1276 = vmatmul.msk.bf16.gmra.mxu0 %vm74_vm0, %v1366_v0 }
 0x439   :  { %v254_v2 = vunpack.c.l.b16 %v1646_v1 }
 0x43b   :  { %v255_v3 = vpack.c.b16 %v254_v2, %v254_v2 }
 0x43d   :  { %256 = vrot.lane.b32.xlu1 %v255_v3, %s1569_s17 }
 0x4af   :  { %v257_v6 = vpop.permute.xlu1 %256 }
 0x4b0   :  { %1289 = vmatmul.msk.bf16.vlgmr.msra.gmra.mxu3 %vm128_vm5, %v257_v6 }
 0x533   :  { %v270_v9 = vpop.f32.mrf.mxu3 }
 0x534   :  { %v274_v10 = vadd.f32 %v270_v9, %v102_v8 }
 0x536   :  { %1403 = vtanh.f32 %v274_v10  ;;  %v1290_v13 = vmul.f32 -1.442695, %v274_v10  ;;  %v106_v10 = vpop.f32.mrf.mxu0 }
 0x538   :  { %1405 = vpow2.f32 %v1290_v13 }
 0x53b   :  { %v272_v11 = vpop.f32.mrf.mxu3 }
 0x53c   :  { %v1404_v12 = vpop.eup %1403  ;;  %v107_v11 = vadd.f32 %v1625_v5, %v106_v10  ;;  %v1368_v10 = vld [vmem:[#allocation3 + $0x18] sm:$0xff] }
 0x53d   :  { %297 = vrot.lane.b32.xlu2 %v1404_v12, %s1572_s22 }
 0x53e   :  { %v1406_v14 = vpop.eup %1405 }
 0x53f   :  { %v278_v15 = vadd.f32 1.0, %v1406_v14 }
 0x541   :  { %1407 = vrcp.f32 %v278_v15  ;;  %v290_v21 = vand.u32 2147483648, %v278_v15  ;;  %vm284_vm11 = vweird.f32 %v278_v15  ;;  %v288_v22 = vand.u32 2147483647, %v278_v15 }
 0x543   :  { %v291_v24 = vor.u32 1.1754944e-38, %v290_v21  ;;  %vm289_vm13 = vcmp.eq.f32.partialorder %v288_v22, 8.507059e+37 }
 0x547   :  { %v1408_v16 = vpop.eup %1407 }
 0x548   :  { %v280_v17 = vmul.f32 %v1408_v16, %v278_v15  ;;  %vm285_vm10 = vweird.f32 %v1408_v16 }
 0x549   :  { %vm286_vm12 = vmor %vm284_vm11, %vm285_vm10 }
 0x54a   :  { %v281_v18 = vsub.f32 1.0, %v280_v17 }
 0x54c   :  { %v282_v19 = vmul.f32 %v1408_v16, %v281_v18 }
 0x54e   :  { %v283_v20 = vadd.f32 %v1408_v16, %v282_v19 }
 0x550   :  { %v287_v23 = vsel %vm286_vm12, %v1408_v16, %v283_v20  ;;  %vm188_vm12 = vcmask 257024  }
 0x551   :  { %v292_v26 = vsel %vm289_vm13, %v291_v24, %v287_v23 }
 0x552   :  { %v295_v28 = vmul.f32 %v292_v26, %v241_v60 }
 0x597   :  { %v298_v25 = vpop.permute.xlu2 %297 }
 0x598   :  { %v300_v27 = vmul.f32 %v298_v25, %v292_v26 }
 0x59a   :  { %302 = vrot.lane.b32.xlu0 %v300_v27, %s1572_s22 }
 0x60c   :  { %v303_v29 = vpop.permute.xlu0 %302 }
 0x60d   :  { %v305_v30 = vadd.f32 %v303_v29, %v295_v28 }
 0x60f   :  { %1409 = vtanh.f32 %v305_v30 }
 0x615   :  { %v1410_v31 = vpop.eup %1409 }
 0x616   :  { %308 = vrot.lane.b32.xlu1 %v1410_v31, %s1572_s22 }
 0x688   :  { %v309_v32 = vpop.permute.xlu1 %308 }
 0x689   :  { %v311_v34 = vmul.f32 %v309_v32, %v292_v26 }
 0x68b   :  { %v1655_v35 = vpack.c.bf16 %v311_v34, %v311_v34 }
 0x68d   :  { %v318_v36 = vunpack.c.l.b16 %v1655_v35 }
 0x68f   :  { %v319_v37 = vpack.c.b16 %v318_v36, %v318_v36 }
 0x691   :  { %320 = vrot.lane.b32.xlu2 %v319_v37, %s1569_s17 }
 0x6eb   :  { %v321_v38 = vpop.permute.xlu2 %320 }
 0x6ec   :  { %1291 = vmatmul.msk.bf16.vlgmr.msrb.gmra.mxu1 %vm128_vm5, %v321_v38 }
 0x769   :  { %v334_v41 = vpop.f32.mrf.mxu1 }
 0x76a   :  { %v338_v42 = vadd.f32 %v334_v41, %v104_v40 }
 0x76c   :  { %1411 = vtanh.f32 %v338_v42  ;;  %v1292_v45 = vmul.f32 -1.442695, %v338_v42 }
 0x76e   :  { %1413 = vpow2.f32 %v1292_v45 }
 0x771   :  { %v336_v43 = vpop.f32.mrf.mxu1 }
 0x772   :  { %v1412_v44 = vpop.eup %1411  ;;  %v108_v43 = vpop.f32.mrf.mxu0 }
 0x773   :  { %361 = vrot.lane.b32.xlu0 %v1412_v44, %s1572_s22  ;;  %v109_v44 = vadd.f32 %v1625_v5, %v108_v43 }
 0x774   :  { %v1414_v46 = vpop.eup %1413 }
 0x775   :  { %v342_v47 = vadd.f32 1.0, %v1414_v46 }
 0x777   :  { %1415 = vrcp.f32 %v342_v47  ;;  %v354_v53 = vand.u32 2147483648, %v342_v47  ;;  %vm348_vm15 = vweird.f32 %v342_v47  ;;  %v352_v54 = vand.u32 2147483647, %v342_v47 }
 0x779   :  { %v355_v56 = vor.u32 1.1754944e-38, %v354_v53  ;;  %vm353_vm2 = vcmp.eq.f32.partialorder %v352_v54, 8.507059e+37 }
 0x77d   :  { %v1416_v48 = vpop.eup %1415 }
 0x77e   :  { %v344_v49 = vmul.f32 %v1416_v48, %v342_v47  ;;  %vm349_vm14 = vweird.f32 %v1416_v48 }
 0x77f   :  { %vm350_vm1 = vmor %vm348_vm15, %vm349_vm14 }
 0x780   :  { %v345_v50 = vsub.f32 1.0, %v344_v49 }
 0x782   :  { %v346_v51 = vmul.f32 %v1416_v48, %v345_v50 }
 0x784   :  { %v347_v52 = vadd.f32 %v1416_v48, %v346_v51 }
 0x786   :  { %v351_v55 = vsel %vm350_vm1, %v1416_v48, %v347_v52 }
 0x787   :  { %v356_v58 = vsel %vm353_vm2, %v355_v56, %v351_v55 }
 0x788   :  { %v359_v60 = vmul.f32 %v356_v58, %v305_v30 }
 0x7e5   :  { %v362_v57 = vpop.permute.xlu0 %361 }
 0x7e6   :  { %v364_v59 = vmul.f32 %v362_v57, %v356_v58 }
 0x7e8   :  { %366 = vrot.lane.b32.xlu1 %v364_v59, %s1572_s22 }
 0x85a   :  { %v367_v61 = vpop.permute.xlu1 %366 }
 0x85b   :  { %v369_v62 = vadd.f32 %v367_v61, %v359_v60 }
 0x85d   :  { %1417 = vtanh.f32 %v369_v62 }
 0x863   :  { %v1418_v63 = vpop.eup %1417 }
 0x864   :  { %372 = vrot.lane.b32.xlu2 %v1418_v63, %s1572_s22 }
 0x8be   :  { %v373_v2 = vpop.permute.xlu2 %372 }
 0x8bf   :  { %v375_v3 = vmul.f32 %v373_v2, %v356_v58 }
 0x8c1   :  { %v1668_v6 = vpack.c.bf16 %v375_v3, %v375_v3 }
 0x8c3   :  { %v382_v7 = vunpack.c.l.b16 %v1668_v6 }
 0x8c5   :  { %v383_v8 = vpack.c.b16 %v382_v7, %v382_v7 }
 0x8c7   :  { %384 = vrot.lane.b32.xlu0 %v383_v8, %s1569_s17 }
 0x939   :  { %v385_v9 = vpop.permute.xlu0 %384 }
 0x93a   :  { %1293 = vmatmul.msk.bf16.vlgmr.msrb.gmra.mxu2 %vm128_vm5, %v385_v9  ;;  %v1369_v9 = vld [vmem:[#allocation3 + $0x20] sm:$0xff] }
 0x93b   :  { %706 = vmatpush.bf16.msra.mxu3 %v1369_v9 }
 0x93f   :  { %707 = vmatpush.bf16.msra.mxu3 %v1368_v10 }
 0x9bd   :  { %v398_v12 = vpop.f32.mrf.mxu2 }
 0x9be   :  { %v402_v13 = vadd.f32 %v398_v12, %v107_v11 }
 0x9c0   :  { %1419 = vtanh.f32 %v402_v13  ;;  %v1294_v16 = vmul.f32 -1.442695, %v402_v13 }
 0x9c2   :  { %1421 = vpow2.f32 %v1294_v16 }
 0x9c5   :  { %v400_v14 = vpop.f32.mrf.mxu2 }
 0x9c6   :  { %v1420_v15 = vpop.eup %1419 }
 0x9c7   :  { %425 = vrot.lane.b32.xlu1 %v1420_v15, %s1572_s22 }
 0x9c8   :  { %v1422_v17 = vpop.eup %1421 }
 0x9c9   :  { %v406_v18 = vadd.f32 1.0, %v1422_v17  ;;  %v1704_v17 = vld [vmem:[#allocation3 + $0x30] sm:$0xff] }
 0x9ca   :  { %747 = vmatpush.bf16.msrb.mxu1 %v1704_v17  ;;  %805 = vmatpush.bf16.msrb.mxu2 %v1704_v17 }
 0x9cb   :  { %1423 = vrcp.f32 %v406_v18  ;;  %v418_v24 = vand.u32 2147483648, %v406_v18  ;;  %vm412_vm4 = vweird.f32 %v406_v18  ;;  %v416_v25 = vand.u32 2147483647, %v406_v18  ;;  %863 = vmatpush.bf16.msrb.mxu0 %v1704_v17 }
 0x9cd   :  { %v419_v27 = vor.u32 1.1754944e-38, %v418_v24  ;;  %vm417_vm7 = vcmp.eq.f32.partialorder %v416_v25, 8.507059e+37 }
 0x9d1   :  { %v1424_v19 = vpop.eup %1423 }
 0x9d2   :  { %v408_v20 = vmul.f32 %v1424_v19, %v406_v18  ;;  %vm413_vm3 = vweird.f32 %v1424_v19  ;;  %v1707_v18 = vld [vmem:[#allocation3 + $0x28] sm:$0xff] }
 0x9d3   :  { %vm414_vm6 = vmor %vm412_vm4, %vm413_vm3  ;;  %748 = vmatpush.bf16.msrb.mxu1 %v1707_v18  ;;  %806 = vmatpush.bf16.msrb.mxu2 %v1707_v18 }
 0x9d4   :  { %v409_v21 = vsub.f32 1.0, %v408_v20  ;;  %864 = vmatpush.bf16.msrb.mxu0 %v1707_v18 }
 0x9d6   :  { %v410_v22 = vmul.f32 %v1424_v19, %v409_v21 }
 0x9d8   :  { %v411_v23 = vadd.f32 %v1424_v19, %v410_v22  ;;  %1037 = vmatpush.bf16.msra.mxu0 %v1704_v17 }
 0x9da   :  { %v415_v26 = vsel %vm414_vm6, %v1424_v19, %v411_v23 }
 0x9db   :  { %v420_v29 = vsel %vm417_vm7, %v419_v27, %v415_v26  ;;  %v1727_v26 = vld [vmem:[%s1837_s2 + $0x1] ss:$0 sm:$0xff] }
 0x9dc   :  { %v423_v31 = vmul.f32 %v420_v29, %v369_v62  ;;  %1038 = vmatpush.bf16.msra.mxu0 %v1707_v18 }
 0xa39   :  { %v426_v28 = vpop.permute.xlu1 %425 }
 0xa3a   :  { %v428_v30 = vmul.f32 %v426_v28, %v420_v29 }
 0xa3c   :  { %430 = vrot.lane.b32.xlu2 %v428_v30, %s1572_s22 }
 0xa96   :  { %v431_v32 = vpop.permute.xlu2 %430 }
 0xa97   :  { %v433_v34 = vadd.f32 %v431_v32, %v423_v31 }
 0xa99   :  { %1425 = vtanh.f32 %v433_v34 }
 0xa9f   :  { %v1426_v36 = vpop.eup %1425 }
 0xaa0   :  { %436 = vrot.lane.b32.xlu0 %v1426_v36, %s1572_s22 }
 0xb12   :  { %v437_v37 = vpop.permute.xlu0 %436 }
 0xb13   :  { %v439_v38 = vmul.f32 %v437_v37, %v420_v29 }
 0xb15   :  { %v1677_v39 = vpack.c.bf16 %v439_v38, %v439_v38 }
 0xb17   :  { %v446_v40 = vunpack.c.l.b16 %v1677_v39 }
 0xb19   :  { %v447_v41 = vpack.c.b16 %v446_v40, %v446_v40 }
 0xb1b   :  { %448 = vrot.lane.b32.xlu1 %v447_v41, %s1569_s17 }
 0xb8d   :  { %v449_v42 = vpop.permute.xlu1 %448 }
 0xb8e   :  { %1295 = vmatmul.msk.bf16.vlgmr.msrb.gmra.mxu3 %vm128_vm5, %v449_v42 }
 0xc11   :  { %v462_v45 = vpop.f32.mrf.mxu3 }
 0xc12   :  { %v466_v46 = vadd.f32 %v462_v45, %v109_v44 }
 0xc14   :  { %1427 = vtanh.f32 %v466_v46  ;;  %v1296_v49 = vmul.f32 -1.442695, %v466_v46 }
 0xc16   :  { %1429 = vpow2.f32 %v1296_v49 }
 0xc19   :  { %v464_v47 = vpop.f32.mrf.mxu3 }
 0xc1a   :  { %v1428_v48 = vpop.eup %1427 }
 0xc1b   :  { %489 = vrot.lane.b32.xlu2 %v1428_v48, %s1572_s22 }
 0xc1c   :  { %v1430_v50 = vpop.eup %1429 }
 0xc1d   :  { %v470_v51 = vadd.f32 1.0, %v1430_v50 }
 0xc1f   :  { %1431 = vrcp.f32 %v470_v51  ;;  %v482_v57 = vand.u32 2147483648, %v470_v51  ;;  %vm476_vm9 = vweird.f32 %v470_v51  ;;  %v480_v58 = vand.u32 2147483647, %v470_v51 }
 0xc21   :  { %v483_v60 = vor.u32 1.1754944e-38, %v482_v57  ;;  %vm481_vm11 = vcmp.eq.f32.partialorder %v480_v58, 8.507059e+37 }
 0xc25   :  { %v1432_v52 = vpop.eup %1431 }
 0xc26   :  { %v472_v53 = vmul.f32 %v1432_v52, %v470_v51  ;;  %vm477_vm8 = vweird.f32 %v1432_v52 }
 0xc27   :  { %vm478_vm10 = vmor %vm476_vm9, %vm477_vm8 }
 0xc28   :  { %v473_v54 = vsub.f32 1.0, %v472_v53 }
 0xc2a   :  { %v474_v55 = vmul.f32 %v1432_v52, %v473_v54 }
 0xc2c   :  { %v475_v56 = vadd.f32 %v1432_v52, %v474_v55 }
 0xc2e   :  { %v479_v59 = vsel %vm478_vm10, %v1432_v52, %v475_v56 }
 0xc2f   :  { %v484_v62 = vsel %vm481_vm11, %v483_v60, %v479_v59 }
 0xc30   :  { %v487_v0 = vmul.f32 %v484_v62, %v433_v34 }
 0xc75   :  { %v490_v61 = vpop.permute.xlu2 %489 }
 0xc76   :  { %v492_v63 = vmul.f32 %v490_v61, %v484_v62 }
 0xc78   :  { %494 = vrot.lane.b32.xlu0 %v492_v63, %s1572_s22 }
 0xc80   :  { %185 = vrot.lane.b32.xlu0 %v1631_v33, %s1569_s17  ;;  %v1367_v33 = vld [vmem:[%s1835_s0 + $0x18] sm:$0xff] }
 0xc81   :  { %1277 = vmatmul.msk.bf16.gmra.mxu0 %vm74_vm0, %v1367_v33 }
 0xcea   :  { %v495_v2 = vpop.permute.xlu0 %494 }
 0xceb   :  { %v1687_v3 = vadd.f32 %v495_v2, %v487_v0 }
 0xced   :  { %1433 = vtanh.f32 %v1687_v3 }
 0xcf2   :  { %v186_v7 = vpop.permute.xlu0 %185 }
 0xcf3   :  { %v1434_v8 = vpop.eup %1433  ;;  %189 = vst.msk [vmem:[#allocation2] sm:$0xf] %vm188_vm12, %v186_v7 }
 0xcf4   :  { %500 = vrot.lane.b32.xlu1 %v1434_v8, %s1572_s22 }
 0xcfc   :  { %250 = vrot.lane.b32.xlu1 %v1646_v1, %s1569_s17 }
 0xcfe   :  { %v111_v20 = vpop.f32.mrf.mxu0 }
 0xcff   :  { %v112_v21 = vadd.f32 %v1625_v5, %v111_v20 }
 0xd66   :  { %v501_v11 = vpop.permute.xlu1 %500 }
 0xd67   :  { %v503_v12 = vmul.f32 %v501_v11, %v484_v62 }
 0xd69   :  { %v1698_v13 = vpack.c.bf16 %v503_v12, %v503_v12 }
 0xd6b   :  { %v510_v14 = vunpack.c.l.b16 %v1698_v13 }
 0xd6d   :  { %v511_v15 = vpack.c.b16 %v510_v14, %v510_v14 }
 0xd6e   :  { %v251_v16 = vpop.permute.xlu1 %250 }
 0xd6f   :  { %253 = vst.msk [vmem:[#allocation2 + $0x4] sm:$0xf] %vm188_vm12, %v251_v16  ;;  %512 = vrot.lane.b32.xlu2 %v511_v15, %s1569_s17 }
 0xd76   :  { %v1372_v1 = vld [vmem:[#allocation2] sm:$0xff] }
 0xd77   :  { %1325 = vmatmul.msk.bf16.vlgmr.msra.gmra.mxu3 %vm128_vm5, %v1372_v1 }
 0xdc9   :  { %v513_v19 = vpop.permute.xlu2 %512 }
 0xdca   :  { %1297 = vmatmul.msk.bf16.vlgmr.msra.gmra.mxu1 %vm128_vm5, %v513_v19 }
 0xdcb   :  { %921 = vmatpush.bf16.msra.mxu1 %v1704_v17 }
 0xdcf   :  { %922 = vmatpush.bf16.msra.mxu1 %v1707_v18 }
 0xdda   :  { %749 = vmatmul.bf16.vlgmr.msrb.gmra.mxu1 %v1571_v4 }
 0xddb   :  { %1095 = vmatpush.bf16.msrb.mxu1 %v1704_v17 }
 0xddf   :  { %1096 = vmatpush.bf16.msrb.mxu1 %v1707_v18 }
 0xdfa   :  { %v709_v4 = vpop.f32.mrf.mxu3 }
 0xdfb   :  { %v710_v27 = vadd.f32 %v1727_v26, %v709_v4 }
 0xe47   :  { %v526_v22 = vpop.f32.mrf.mxu1 }
 0xe48   :  { %v530_v23 = vadd.f32 %v526_v22, %v112_v21 }
 0xe4a   :  { %1435 = vtanh.f32 %v530_v23  ;;  %v1298_v31 = vmul.f32 -1.442695, %v530_v23 }
 0xe4f   :  { %v528_v24 = vpop.f32.mrf.mxu1 }
 0xe50   :  { %v1436_v25 = vpop.eup %1435 }
 0xe51   :  { %553 = vrot.lane.b32.xlu2 %v1436_v25, %s1572_s22  ;;  %v711_v25 = vpop.f32.mrf.mxu3 }
 0xe52   :  { %v712_v4 = vadd.f32 %v1727_v26, %v711_v25 }
 0xe57   :  { %v750_v28 = vpop.f32.mrf.mxu1 }
 0xe58   :  { %v754_v29 = vadd.f32 %v750_v28, %v710_v27 }
 0xe5a   :  { %1437 = vtanh.f32 %v754_v29  ;;  %v1337_v43 = vmul.f32 -1.442695, %v754_v29 }
 0xe5b   :  { %1439 = vpow2.f32 %v1298_v31 }
 0xe5f   :  { %v752_v30 = vpop.f32.mrf.mxu1 }
 0xe60   :  { %v1438_v5 = vpop.eup %1437 }
 0xe61   :  { %777 = vrot.lane.b32.xlu0 %v1438_v5, %s1572_s22  ;;  %v1440_v32 = vpop.eup %1439 }
 0xe62   :  { %v534_v34 = vadd.f32 1.0, %v1440_v32 }
 0xe64   :  { %1441 = vrcp.f32 %v534_v34  ;;  %v546_v42 = vand.u32 2147483648, %v534_v34  ;;  %vm540_vm13 = vweird.f32 %v534_v34  ;;  %v544_v44 = vand.u32 2147483647, %v534_v34 }
 0xe65   :  { %1443 = vpow2.f32 %v1337_v43 }
 0xe66   :  { %v547_v46 = vor.u32 1.1754944e-38, %v546_v42  ;;  %vm545_vm15 = vcmp.eq.f32.partialorder %v544_v44, 8.507059e+37 }
 0xe6a   :  { %v1442_v36 = vpop.eup %1441 }
 0xe6b   :  { %v536_v37 = vmul.f32 %v1442_v36, %v534_v34  ;;  %vm541_vm0 = vweird.f32 %v1442_v36  ;;  %v1444_v50 = vpop.eup %1443 }
 0xe6c   :  { %vm542_vm14 = vmor %vm540_vm13, %vm541_vm0  ;;  %v758_v51 = vadd.f32 1.0, %v1444_v50 }
 0xe6d   :  { %v537_v38 = vsub.f32 1.0, %v536_v37 }
 0xe6e   :  { %1445 = vrcp.f32 %v758_v51  ;;  %v770_v57 = vand.u32 2147483648, %v758_v51  ;;  %vm764_vm2 = vweird.f32 %v758_v51  ;;  %v768_v58 = vand.u32 2147483647, %v758_v51 }
 0xe6f   :  { %v538_v40 = vmul.f32 %v1442_v36, %v537_v38 }
 0xe70   :  { %v771_v60 = vor.u32 1.1754944e-38, %v770_v57  ;;  %vm769_vm4 = vcmp.eq.f32.partialorder %v768_v58, 8.507059e+37 }
 0xe71   :  { %v539_v41 = vadd.f32 %v1442_v36, %v538_v40 }
 0xe73   :  { %v543_v45 = vsel %vm542_vm14, %v1442_v36, %v539_v41 }
 0xe74   :  { %v548_v48 = vsel %vm545_vm15, %v547_v46, %v543_v45  ;;  %v1446_v52 = vpop.eup %1445 }
 0xe75   :  { %v760_v53 = vmul.f32 %v1446_v52, %v758_v51  ;;  %vm765_vm1 = vweird.f32 %v1446_v52  ;;  %v551_v0 = vmul.f32 %v548_v48, %v1687_v3 }
 0xe76   :  { %vm766_vm3 = vmor %vm764_vm2, %vm765_vm1 }
 0xe77   :  { %v761_v54 = vsub.f32 1.0, %v760_v53 }
 0xe79   :  { %v762_v55 = vmul.f32 %v1446_v52, %v761_v54 }
 0xe7b   :  { %v763_v56 = vadd.f32 %v1446_v52, %v762_v55 }
 0xe7d   :  { %v767_v59 = vsel %vm766_vm3, %v1446_v52, %v763_v56 }
 0xe7e   :  { %v772_v62 = vsel %vm769_vm4, %v771_v60, %v767_v59 }
 0xe7f   :  { %v775_v9 = vmul.f32 0.0, %v772_v62 }
 0xeab   :  { %v554_v47 = vpop.permute.xlu2 %553 }
 0xeac   :  { %v556_v49 = vmul.f32 %v554_v47, %v548_v48 }
 0xeae   :  { %558 = vrot.lane.b32.xlu1 %v556_v49, %s1572_s22 }
 0xed3   :  { %v778_v61 = vpop.permute.xlu0 %777 }
 0xed4   :  { %v780_v63 = vmul.f32 %v778_v61, %v772_v62 }
 0xed6   :  { %782 = vrot.lane.b32.xlu2 %v780_v63, %s1572_s22 }
 0xf20   :  { %v559_v2 = vpop.permute.xlu1 %558 }
 0xf21   :  { %v1734_v7 = vadd.f32 %v559_v2, %v551_v0 }
 0xf23   :  { %1447 = vtanh.f32 %v1734_v7 }
 0xf29   :  { %v1448_v8 = vpop.eup %1447 }
 0xf2a   :  { %564 = vrot.lane.b32.xlu0 %v1448_v8, %s1572_s22 }
 0xf30   :  { %v783_v10 = vpop.permute.xlu2 %782 }
 0xf31   :  { %v785_v33 = vadd.f32 %v783_v10, %v775_v9 }
 0xf33   :  { %1449 = vtanh.f32 %v785_v33 }
 0xf39   :  { %v1450_v11 = vpop.eup %1449 }
 0xf3a   :  { %788 = vrot.lane.b32.xlu1 %v1450_v11, %s1572_s22 }
 0xf9c   :  { %v565_v12 = vpop.permute.xlu0 %564 }
 0xf9d   :  { %v567_v14 = vmul.f32 %v565_v12, %v548_v48 }
 0xf9f   :  { %v1739_v15 = vpack.c.bf16 %v567_v14, %v567_v14 }
 0xfa1   :  { %v574_v3 = vunpack.c.l.b16 %v1739_v15 }
 0xfa3   :  { %v575_v16 = vpack.c.b16 %v574_v3, %v574_v3 }
 0xfa5   :  { %576 = vrot.lane.b32.xlu2 %v575_v16, %s1569_s17 }
 0xfac   :  { %v789_v1 = vpop.permute.xlu1 %788 }
 0xfad   :  { %v791_v19 = vmul.f32 %v789_v1, %v772_v62 }
 0xfaf   :  { %v792_v20 = vpack.c.bf16 %v791_v19, %v791_v19 }
 0xfb1   :  { %794 = vrot.lane.b32.xlu0 %v792_v20, %s1569_s17 }
 0xfff   :  { %v577_v21 = vpop.permute.xlu2 %576 }
0x1000   :  { %1299 = vmatmul.msk.bf16.vlgmr.msra.gmra.mxu2 %vm128_vm5, %v577_v21 }
0x1001   :  { %979 = vmatpush.bf16.msra.mxu2 %v1704_v17 }
0x1005   :  { %980 = vmatpush.bf16.msra.mxu2 %v1707_v18 }
0x1023   :  { %v795_v22 = vpop.permute.xlu0 %794 }
0x1024   :  { %1338 = vmatmul.msk.bf16.vlgmr.msrb.gmra.mxu2 %vm128_vm5, %v795_v22 }
0x1025   :  { %1153 = vmatpush.bf16.msrb.mxu2 %v1704_v17 }
0x1029   :  { %1154 = vmatpush.bf16.msrb.mxu2 %v1707_v18 }
0x1083   :  { %v1750_v23 = vpop.f32.mrf.mxu2 }
0x108b   :  { %v592_v24 = vpop.f32.mrf.mxu2 }
0x10a7   :  { %v808_v27 = vpop.f32.mrf.mxu2 }
0x10a8   :  { %v812_v28 = vadd.f32 %v808_v27, %v712_v4 }
0x10aa   :  { %1451 = vtanh.f32 %v812_v28  ;;  %v1339_v5 = vmul.f32 -1.442695, %v812_v28 }
0x10ac   :  { %1453 = vpow2.f32 %v1339_v5 }
0x10af   :  { %v810_v29 = vpop.f32.mrf.mxu2 }
0x10b0   :  { %v1452_v30 = vpop.eup %1451 }
0x10b1   :  { %835 = vrot.lane.b32.xlu1 %v1452_v30, %s1572_s22 }
0x10b2   :  { %v1454_v17 = vpop.eup %1453 }
0x10b3   :  { %v816_v18 = vadd.f32 1.0, %v1454_v17 }
0x10b5   :  { %1455 = vrcp.f32 %v816_v18  ;;  %v828_v38 = vand.u32 2147483648, %v816_v18  ;;  %vm822_vm7 = vweird.f32 %v816_v18  ;;  %v826_v40 = vand.u32 2147483647, %v816_v18 }
0x10b7   :  { %v829_v42 = vor.u32 1.1754944e-38, %v828_v38  ;;  %vm827_vm9 = vcmp.eq.f32.partialorder %v826_v40, 8.507059e+37 }
0x10b9   :  { %314 = vrot.lane.b32.xlu1 %v1655_v35, %s1569_s17 }
0x10bb   :  { %v1456_v31 = vpop.eup %1455 }
0x10bc   :  { %v818_v32 = vmul.f32 %v1456_v31, %v816_v18  ;;  %vm823_vm6 = vweird.f32 %v1456_v31 }
0x10bd   :  { %vm824_vm8 = vmor %vm822_vm7, %vm823_vm6 }
0x10be   :  { %v819_v34 = vsub.f32 1.0, %v818_v32 }
0x10c0   :  { %v820_v36 = vmul.f32 %v1456_v31, %v819_v34 }
0x10c2   :  { %v821_v37 = vadd.f32 %v1456_v31, %v820_v36 }
0x10c4   :  { %v825_v41 = vsel %vm824_vm8, %v1456_v31, %v821_v37 }
0x10c5   :  { %v830_v35 = vsel %vm827_vm9, %v829_v42, %v825_v41 }
0x10c6   :  { %v833_v46 = vmul.f32 %v830_v35, %v785_v33 }
0x1123   :  { %v836_v43 = vpop.permute.xlu1 %835 }
0x1124   :  { %v838_v44 = vmul.f32 %v836_v43, %v830_v35 }
0x1126   :  { %840 = vrot.lane.b32.xlu2 %v838_v44, %s1572_s22 }
0x112b   :  { %v315_v45 = vpop.permute.xlu1 %314 }
0x112c   :  { %317 = vst.msk [vmem:[#allocation2 + $0x8] sm:$0xf] %vm188_vm12, %v315_v45 }
0x112e   :  { %378 = vrot.lane.b32.xlu2 %v1668_v6, %s1569_s17  ;;  %v1765_v6 = vpop.f32.mrf.mxu0 }
0x1180   :  { %v841_v47 = vpop.permute.xlu2 %840 }
0x1181   :  { %v843_v48 = vadd.f32 %v841_v47, %v833_v46 }
0x1183   :  { %1457 = vtanh.f32 %v843_v48 }
0x1188   :  { %v379_v49 = vpop.permute.xlu2 %378 }
0x1189   :  { %v1458_v50 = vpop.eup %1457  ;;  %381 = vst.msk [vmem:[#allocation2 + $0xc] sm:$0xf] %vm188_vm12, %v379_v49 }
0x118a   :  { %846 = vrot.lane.b32.xlu0 %v1458_v50, %s1572_s22 }
0x1190   :  { %v1373_v51 = vld [vmem:[#allocation2 + $0x8] sm:$0xff] }
0x1191   :  { %1326 = vmatmul.msk.bf16.gmra.mxu3 %vm128_vm5, %v1373_v51 }
0x11fc   :  { %v847_v52 = vpop.permute.xlu0 %846 }
0x11fd   :  { %v849_v53 = vmul.f32 %v847_v52, %v830_v35 }
0x11ff   :  { %v850_v54 = vpack.c.bf16 %v849_v53, %v849_v53 }
0x1201   :  { %852 = vrot.lane.b32.xlu0 %v850_v54, %s1569_s17 }
0x1214   :  { %v714_v56 = vpop.f32.mrf.mxu3 }
0x1215   :  { %v715_v57 = vadd.f32 %v1727_v26, %v714_v56 }
0x121c   :  { %v716_v29 = vpop.f32.mrf.mxu3 }
0x121d   :  { %v717_v30 = vadd.f32 %v1727_v26, %v716_v29 }
0x1273   :  { %v853_v55 = vpop.permute.xlu0 %852 }
0x1274   :  { %1340 = vmatmul.msk.bf16.vlgmr.msrb.gmra.mxu0 %vm128_vm5, %v853_v55 }
0x12f1   :  { %v866_v58 = vpop.f32.mrf.mxu0 }
0x12f2   :  { %v870_v59 = vadd.f32 %v866_v58, %v715_v57 }
0x12f4   :  { %1459 = vtanh.f32 %v870_v59  ;;  %v1341_v62 = vmul.f32 -1.442695, %v870_v59 }
0x12f6   :  { %1461 = vpow2.f32 %v1341_v62 }
0x12f9   :  { %v868_v60 = vpop.f32.mrf.mxu0 }
0x12fa   :  { %v1460_v61 = vpop.eup %1459 }
0x12fb   :  { %893 = vrot.lane.b32.xlu1 %v1460_v61, %s1572_s22 }
0x12fc   :  { %v1462_v63 = vpop.eup %1461 }
0x12fd   :  { %v874_v0 = vadd.f32 1.0, %v1462_v63 }
0x12ff   :  { %1463 = vrcp.f32 %v874_v0  ;;  %v886_v11 = vand.u32 2147483648, %v874_v0  ;;  %vm880_vm11 = vweird.f32 %v874_v0  ;;  %v884_v12 = vand.u32 2147483647, %v874_v0 }
0x1301   :  { %v887_v3 = vor.u32 1.1754944e-38, %v886_v11  ;;  %vm885_vm13 = vcmp.eq.f32.partialorder %v884_v12, 8.507059e+37 }
0x1305   :  { %v1464_v2 = vpop.eup %1463 }
0x1306   :  { %v876_v8 = vmul.f32 %v1464_v2, %v874_v0  ;;  %vm881_vm10 = vweird.f32 %v1464_v2 }
0x1307   :  { %vm882_vm0 = vmor %vm880_vm11, %vm881_vm10 }
0x1308   :  { %v877_v9 = vsub.f32 1.0, %v876_v8 }
0x130a   :  { %v878_v10 = vmul.f32 %v1464_v2, %v877_v9 }
0x130c   :  { %v879_v33 = vadd.f32 %v1464_v2, %v878_v10 }
0x130e   :  { %v883_v14 = vsel %vm882_vm0, %v1464_v2, %v879_v33 }
0x130f   :  { %v888_v1 = vsel %vm885_vm13, %v887_v3, %v883_v14 }
0x1310   :  { %v891_v20 = vmul.f32 %v888_v1, %v843_v48 }
0x136d   :  { %v894_v16 = vpop.permute.xlu1 %893 }
0x136e   :  { %v896_v19 = vmul.f32 %v894_v16, %v888_v1 }
0x1370   :  { %898 = vrot.lane.b32.xlu2 %v896_v19, %s1572_s22 }
0x13ca   :  { %v899_v21 = vpop.permute.xlu2 %898 }
0x13cb   :  { %v901_v22 = vadd.f32 %v899_v21, %v891_v20 }
0x13cd   :  { %1465 = vtanh.f32 %v901_v22 }
0x13d3   :  { %v1466_v24 = vpop.eup %1465 }
0x13d4   :  { %904 = vrot.lane.b32.xlu0 %v1466_v24, %s1572_s22 }
0x1446   :  { %v905_v25 = vpop.permute.xlu0 %904 }
0x1447   :  { %v907_v4 = vmul.f32 %v905_v25, %v888_v1  ;;  %v1515_v1 = vld [vmem:[%s1837_s2] ss:$0 sm:$0xff] }
0x1448   :  { %v114_v19 = vadd.f32 %v1515_v1, %v1765_v6 }
0x1449   :  { %v908_v27 = vpack.c.bf16 %v907_v4, %v907_v4 }
0x144a   :  { %v594_v21 = vadd.f32 %v1750_v23, %v114_v19 }
0x144b   :  { %910 = vrot.lane.b32.xlu1 %v908_v27, %s1569_s17 }
0x14bd   :  { %v911_v28 = vpop.permute.xlu1 %910 }
0x14be   :  { %1342 = vmatmul.msk.bf16.vlgmr.msra.gmra.mxu1 %vm128_vm5, %v911_v28 }
0x153b   :  { %v924_v5 = vpop.f32.mrf.mxu1 }
0x153c   :  { %v928_v17 = vadd.f32 %v924_v5, %v717_v30  ;;  %v1300_v30 = vmul.f32 -1.442695, %v594_v21 }
0x153e   :  { %1467 = vtanh.f32 %v928_v17  ;;  %v1343_v32 = vmul.f32 -1.442695, %v928_v17 }
0x1540   :  { %1469 = vpow2.f32 %v1343_v32 }
0x1543   :  { %v926_v18 = vpop.f32.mrf.mxu1 }
0x1544   :  { %v1468_v31 = vpop.eup %1467 }
0x1545   :  { %951 = vrot.lane.b32.xlu2 %v1468_v31, %s1572_s22 }
0x1546   :  { %v1470_v34 = vpop.eup %1469 }
0x1547   :  { %v932_v36 = vadd.f32 1.0, %v1470_v34 }
0x1549   :  { %1471 = vrcp.f32 %v932_v36  ;;  %v944_v43 = vand.u32 2147483648, %v932_v36  ;;  %vm938_vm15 = vweird.f32 %v932_v36  ;;  %v942_v35 = vand.u32 2147483647, %v932_v36 }
0x154b   :  { %v945_v45 = vor.u32 1.1754944e-38, %v944_v43  ;;  %vm943_vm2 = vcmp.eq.f32.partialorder %v942_v35, 8.507059e+37 }
0x154d   :  { %442 = vrot.lane.b32.xlu2 %v1677_v39, %s1569_s17 }
0x154f   :  { %v1472_v37 = vpop.eup %1471 }
0x1550   :  { %v934_v38 = vmul.f32 %v1472_v37, %v932_v36  ;;  %vm939_vm14 = vweird.f32 %v1472_v37 }
0x1551   :  { %vm940_vm1 = vmor %vm938_vm15, %vm939_vm14 }
0x1552   :  { %v935_v40 = vsub.f32 1.0, %v934_v38 }
0x1554   :  { %v936_v41 = vmul.f32 %v1472_v37, %v935_v40 }
0x1556   :  { %v937_v42 = vadd.f32 %v1472_v37, %v936_v41 }
0x1558   :  { %v941_v44 = vsel %vm940_vm1, %v1472_v37, %v937_v42 }
0x1559   :  { %v946_v39 = vsel %vm943_vm2, %v945_v45, %v941_v44 }
0x155a   :  { %v949_v49 = vmul.f32 %v946_v39, %v901_v22 }
0x159f   :  { %v952_v46 = vpop.permute.xlu2 %951 }
0x15a0   :  { %v954_v47 = vmul.f32 %v952_v46, %v946_v39 }
0x15a2   :  { %956 = vrot.lane.b32.xlu0 %v954_v47, %s1572_s22 }
0x15a7   :  { %v443_v48 = vpop.permute.xlu2 %442 }
0x15a8   :  { %445 = vst.msk [vmem:[#allocation2 + $0x10] sm:$0xf] %vm188_vm12, %v443_v48 }
0x15aa   :  { %506 = vrot.lane.b32.xlu0 %v1698_v13, %s1569_s17 }
0x1614   :  { %v957_v50 = vpop.permute.xlu0 %956 }
0x1615   :  { %v959_v51 = vadd.f32 %v957_v50, %v949_v49 }
0x1617   :  { %1473 = vtanh.f32 %v959_v51 }
0x161c   :  { %v507_v52 = vpop.permute.xlu0 %506 }
0x161d   :  { %v1474_v53 = vpop.eup %1473  ;;  %509 = vst.msk [vmem:[#allocation2 + $0x14] sm:$0xf] %vm188_vm12, %v507_v52 }
0x161e   :  { %962 = vrot.lane.b32.xlu1 %v1474_v53, %s1572_s22 }
0x1624   :  { %v1374_v54 = vld [vmem:[#allocation2 + $0x10] sm:$0xff] }
0x1625   :  { %1327 = vmatmul.msk.bf16.gmra.mxu3 %vm128_vm5, %v1374_v54 }
0x1690   :  { %v963_v55 = vpop.permute.xlu1 %962 }
0x1691   :  { %v965_v56 = vmul.f32 %v963_v55, %v946_v39 }
0x1693   :  { %v966_v57 = vpack.c.bf16 %v965_v56, %v965_v56 }
0x1695   :  { %968 = vrot.lane.b32.xlu1 %v966_v57, %s1569_s17 }
0x16a8   :  { %v719_v13 = vpop.f32.mrf.mxu3 }
0x16a9   :  { %v720_v59 = vadd.f32 %v1727_v26, %v719_v13 }
0x16b0   :  { %v721_v39 = vpop.f32.mrf.mxu3 }
0x16b1   :  { %v722_v47 = vadd.f32 %v1727_v26, %v721_v39 }
0x1707   :  { %v969_v58 = vpop.permute.xlu1 %968 }
0x1708   :  { %1344 = vmatmul.msk.bf16.vlgmr.msra.gmra.mxu2 %vm128_vm5, %v969_v58 }
0x178b   :  { %v982_v60 = vpop.f32.mrf.mxu2 }
0x178c   :  { %v986_v61 = vadd.f32 %v982_v60, %v720_v59 }
0x178e   :  { %1475 = vtanh.f32 %v986_v61  ;;  %v1345_v0 = vmul.f32 -1.442695, %v986_v61 }
0x1790   :  { %1477 = vpow2.f32 %v1345_v0 }
0x1793   :  { %v984_v62 = vpop.f32.mrf.mxu2 }
0x1794   :  { %v1476_v63 = vpop.eup %1475 }
0x1795   :  { %1009 = vrot.lane.b32.xlu2 %v1476_v63, %s1572_s22 }
0x1796   :  { %v1478_v2 = vpop.eup %1477 }
0x1797   :  { %v990_v8 = vadd.f32 1.0, %v1478_v2 }
0x1799   :  { %1479 = vrcp.f32 %v990_v8  ;;  %v1002_v14 = vand.u32 2147483648, %v990_v8  ;;  %vm996_vm4 = vweird.f32 %v990_v8  ;;  %v1000_v3 = vand.u32 2147483647, %v990_v8 }
0x179a   :  { %1481 = vtanh.f32 %v594_v21 }
0x179b   :  { %v1003_v20 = vor.u32 1.1754944e-38, %v1002_v14  ;;  %vm1001_vm7 = vcmp.eq.f32.partialorder %v1000_v3, 8.507059e+37 }
0x179f   :  { %v1480_v9 = vpop.eup %1479 }
0x17a0   :  { %v992_v10 = vmul.f32 %v1480_v9, %v990_v8  ;;  %vm997_vm3 = vweird.f32 %v1480_v9  ;;  %v1482_v4 = vpop.eup %1481 }
0x17a1   :  { %vm998_vm6 = vmor %vm996_vm4, %vm997_vm3 }
0x17a2   :  { %v993_v33 = vsub.f32 1.0, %v992_v10 }
0x17a4   :  { %v994_v11 = vmul.f32 %v1480_v9, %v993_v33 }
0x17a6   :  { %v995_v12 = vadd.f32 %v1480_v9, %v994_v11 }
0x17a8   :  { %v999_v16 = vsel %vm998_vm6, %v1480_v9, %v995_v12 }
0x17a9   :  { %v1004_v24 = vsel %vm1001_vm7, %v1003_v20, %v999_v16 }
0x17aa   :  { %v1007_v27 = vmul.f32 %v1004_v24, %v959_v51 }
0x17ef   :  { %v1010_v22 = vpop.permute.xlu2 %1009 }
0x17f0   :  { %v1012_v25 = vmul.f32 %v1010_v22, %v1004_v24 }
0x17f2   :  { %1014 = vrot.lane.b32.xlu0 %v1012_v25, %s1572_s22 }
0x17fa   :  { %617 = vrot.lane.b32.xlu0 %v1482_v4, %s1572_s22 }
0x1864   :  { %v1015_v28 = vpop.permute.xlu0 %1014 }
0x1865   :  { %v1795_v29 = vadd.f32 %v1015_v28, %v1007_v27 }
0x1867   :  { %1483 = vtanh.f32 %v1795_v29 }
0x1868   :  { %1485 = vpow2.f32 %v1300_v30 }
0x186c   :  { %v618_v35 = vpop.permute.xlu0 %617 }
0x186d   :  { %v1484_v6 = vpop.eup %1483 }
0x186e   :  { %1020 = vrot.lane.b32.xlu1 %v1484_v6, %s1572_s22  ;;  %v1486_v23 = vpop.eup %1485 }
0x186f   :  { %v598_v5 = vadd.f32 1.0, %v1486_v23 }
0x1871   :  { %1487 = vrcp.f32 %v598_v5  ;;  %v610_v40 = vand.u32 2147483648, %v598_v5  ;;  %vm604_vm9 = vweird.f32 %v598_v5  ;;  %v608_v41 = vand.u32 2147483647, %v598_v5 }
0x1873   :  { %v611_v43 = vor.u32 1.1754944e-38, %v610_v40  ;;  %vm609_vm11 = vcmp.eq.f32.partialorder %v608_v41, 8.507059e+37 }
0x1877   :  { %v1488_v17 = vpop.eup %1487 }
0x1878   :  { %v600_v18 = vmul.f32 %v1488_v17, %v598_v5  ;;  %vm605_vm8 = vweird.f32 %v1488_v17 }
0x1879   :  { %vm606_vm10 = vmor %vm604_vm9, %vm605_vm8 }
0x187a   :  { %v601_v31 = vsub.f32 1.0, %v600_v18 }
0x187c   :  { %v602_v32 = vmul.f32 %v1488_v17, %v601_v31 }
0x187e   :  { %v603_v37 = vadd.f32 %v1488_v17, %v602_v32 }
0x1880   :  { %v607_v42 = vsel %vm606_vm10, %v1488_v17, %v603_v37 }
0x1881   :  { %v612_v44 = vsel %vm609_vm11, %v611_v43, %v607_v42 }
0x1882   :  { %v620_v45 = vmul.f32 %v618_v35, %v612_v44  ;;  %v615_v51 = vmul.f32 %v612_v44, %v1734_v7 }
0x18e0   :  { %v1021_v34 = vpop.permute.xlu1 %1020 }
0x18e1   :  { %v1023_v36 = vmul.f32 %v1021_v34, %v1004_v24 }
0x18e3   :  { %v1024_v38 = vpack.c.bf16 %v1023_v36, %v1023_v36 }
0x18e5   :  { %1026 = vrot.lane.b32.xlu2 %v1024_v38, %s1569_s17 }
0x18ed   :  { %622 = vrot.lane.b32.xlu2 %v620_v45, %s1572_s22 }
0x193f   :  { %v1027_v46 = vpop.permute.xlu2 %1026 }
0x1940   :  { %1346 = vmatmul.msk.bf16.vlgmr.msra.gmra.mxu0 %vm128_vm5, %v1027_v46 }
0x1947   :  { %v623_v50 = vpop.permute.xlu2 %622 }
0x1948   :  { %v625_v52 = vadd.f32 %v623_v50, %v615_v51 }
0x19bd   :  { %v1040_v48 = vpop.f32.mrf.mxu0 }
0x19be   :  { %v1044_v49 = vadd.f32 %v1040_v48, %v722_v47 }
0x19c0   :  { %1489 = vtanh.f32 %v1044_v49  ;;  %v1347_v56 = vmul.f32 -1.442695, %v1044_v49 }
0x19c1   :  { %1491 = vtanh.f32 %v625_v52 }
0x19c2   :  { %1493 = vpow2.f32 %v1347_v56 }
0x19c5   :  { %v1042_v53 = vpop.f32.mrf.mxu0 }
0x19c6   :  { %v1490_v54 = vpop.eup %1489 }
0x19c7   :  { %1067 = vrot.lane.b32.xlu1 %v1490_v54, %s1572_s22  ;;  %v1492_v55 = vpop.eup %1491 }
0x19c8   :  { %v1494_v57 = vpop.eup %1493 }
0x19c9   :  { %v1048_v58 = vadd.f32 1.0, %v1494_v57 }
0x19cb   :  { %1495 = vrcp.f32 %v1048_v58  ;;  %v1060_v7 = vand.u32 2147483648, %v1048_v58  ;;  %vm1054_vm13 = vweird.f32 %v1048_v58  ;;  %v1058_v63 = vand.u32 2147483647, %v1048_v58 }
0x19cd   :  { %v1061_v2 = vor.u32 1.1754944e-38, %v1060_v7  ;;  %vm1059_vm15 = vcmp.eq.f32.partialorder %v1058_v63, 8.507059e+37 }
0x19cf   :  { %628 = vrot.lane.b32.xlu1 %v1492_v55, %s1572_s22 }
0x19d1   :  { %v1496_v13 = vpop.eup %1495 }
0x19d2   :  { %v1050_v59 = vmul.f32 %v1496_v13, %v1048_v58  ;;  %vm1055_vm0 = vweird.f32 %v1496_v13 }
0x19d3   :  { %vm1056_vm14 = vmor %vm1054_vm13, %vm1055_vm0 }
0x19d4   :  { %v1051_v60 = vsub.f32 1.0, %v1050_v59 }
0x19d6   :  { %v1052_v61 = vmul.f32 %v1496_v13, %v1051_v60 }
0x19d8   :  { %v1053_v62 = vadd.f32 %v1496_v13, %v1052_v61 }
0x19da   :  { %v1057_v0 = vsel %vm1056_vm14, %v1496_v13, %v1053_v62 }
0x19db   :  { %v1062_v9 = vsel %vm1059_vm15, %v1061_v2, %v1057_v0 }
0x19dc   :  { %v1065_v14 = vmul.f32 %v1062_v9, %v1795_v29 }
0x1a39   :  { %v1068_v8 = vpop.permute.xlu1 %1067 }
0x1a3a   :  { %v1070_v10 = vmul.f32 %v1068_v8, %v1062_v9 }
0x1a3c   :  { %1072 = vrot.lane.b32.xlu0 %v1070_v10, %s1572_s22 }
0x1a41   :  { %v629_v33 = vpop.permute.xlu1 %628 }
0x1a42   :  { %v631_v11 = vmul.f32 %v629_v33, %v612_v44 }
0x1a44   :  { %v632_v12 = vpack.c.bf16 %v631_v11, %v631_v11  ;;  %570 = vrot.lane.b32.xlu0 %v1739_v15, %s1569_s17 }
0x1a46   :  { %634 = vrot.lane.b32.xlu1 %v632_v12, %s1569_s17 }
0x1aae   :  { %v1073_v3 = vpop.permute.xlu0 %1072 }
0x1aaf   :  { %v1075_v16 = vadd.f32 %v1073_v3, %v1065_v14  ;;  %v1377_v3 = vld [vmem:[#allocation3 + $0x40] sm:$0xff] }
0x1ab0   :  { %1229 = vmatpush.bf16.msrb.mxu0 %v1377_v3 }
0x1ab1   :  { %1497 = vtanh.f32 %v1075_v16 }
0x1ab6   :  { %v571_v1 = vpop.permute.xlu0 %570 }
0x1ab7   :  { %v1498_v19 = vpop.eup %1497  ;;  %573 = vst.msk [vmem:[#allocation2 + $0x18] sm:$0xf] %vm188_vm12, %v571_v1 }
0x1ab8   :  { %1078 = vrot.lane.b32.xlu2 %v1498_v19, %s1572_s22  ;;  %v635_v20 = vpop.permute.xlu1 %634 }
0x1ab9   :  { %637 = vst.msk [vmem:[#allocation2 + $0x1c] sm:$0xf] %vm188_vm12, %v635_v20 }
0x1ac0   :  { %v1375_v21 = vld [vmem:[#allocation2 + $0x18] sm:$0xff] }
0x1ac1   :  { %1328 = vmatmul.msk.bf16.gmra.mxu3 %vm128_vm5, %v1375_v21 }
0x1b12   :  { %v1079_v15 = vpop.permute.xlu2 %1078 }
0x1b13   :  { %v1081_v22 = vmul.f32 %v1079_v15, %v1062_v9  ;;  %v1386_v15 = vld [vmem:[%s1837_s2 + $0x2] ss:$0 sm:$0xff] }
0x1b15   :  { %v1082_v24 = vpack.c.bf16 %v1081_v22, %v1081_v22 }
0x1b17   :  { %1084 = vrot.lane.b32.xlu2 %v1082_v24, %s1569_s17 }
0x1b44   :  { %v724_v4 = vpop.f32.mrf.mxu3 }
0x1b45   :  { %v725_v27 = vadd.f32 %v1727_v26, %v724_v4 }
0x1b4c   :  { %v726_v51 = vpop.f32.mrf.mxu3 }
0x1b4d   :  { %v727_v52 = vadd.f32 %v1727_v26, %v726_v51 }
0x1b71   :  { %v1085_v25 = vpop.permute.xlu2 %1084 }
0x1b72   :  { %1348 = vmatmul.msk.bf16.vlgmr.msrb.gmra.mxu1 %vm128_vm5, %v1085_v25 }
0x1bef   :  { %v1098_v28 = vpop.f32.mrf.mxu1 }
0x1bf0   :  { %v1102_v29 = vadd.f32 %v1098_v28, %v725_v27 }
0x1bf2   :  { %1499 = vtanh.f32 %v1102_v29  ;;  %v1349_v23 = vmul.f32 -1.442695, %v1102_v29 }
0x1bf4   :  { %1501 = vpow2.f32 %v1349_v23 }
0x1bf7   :  { %v1100_v6 = vpop.f32.mrf.mxu1 }
0x1bf8   :  { %v1500_v30 = vpop.eup %1499 }
0x1bf9   :  { %1125 = vrot.lane.b32.xlu0 %v1500_v30, %s1572_s22 }
0x1bfa   :  { %v1502_v5 = vpop.eup %1501 }
0x1bfb   :  { %v1106_v17 = vadd.f32 1.0, %v1502_v5 }
0x1bfd   :  { %1503 = vrcp.f32 %v1106_v17  ;;  %v1118_v37 = vand.u32 2147483648, %v1106_v17  ;;  %vm1112_vm1 = vweird.f32 %v1106_v17  ;;  %v1116_v38 = vand.u32 2147483647, %v1106_v17 }
0x1bff   :  { %v1119_v41 = vor.u32 1.1754944e-38, %v1118_v37  ;;  %vm1117_vm3 = vcmp.eq.f32.partialorder %v1116_v38, 8.507059e+37 }
0x1c03   :  { %v1504_v18 = vpop.eup %1503 }
0x1c04   :  { %v1108_v31 = vmul.f32 %v1504_v18, %v1106_v17  ;;  %vm1113_vm12 = vweird.f32 %v1504_v18 }
0x1c05   :  { %vm1114_vm2 = vmor %vm1112_vm1, %vm1113_vm12 }
0x1c06   :  { %v1109_v32 = vsub.f32 1.0, %v1108_v31 }
0x1c08   :  { %v1110_v34 = vmul.f32 %v1504_v18, %v1109_v32 }
0x1c0a   :  { %v1111_v36 = vadd.f32 %v1504_v18, %v1110_v34 }
0x1c0c   :  { %v1115_v40 = vsel %vm1114_vm2, %v1504_v18, %v1111_v36 }
0x1c0d   :  { %v1120_v43 = vsel %vm1117_vm3, %v1119_v41, %v1115_v40 }
0x1c0e   :  { %v1123_v44 = vmul.f32 %v1120_v43, %v1075_v16  ;;  %v1376_v16 = vld [vmem:[#allocation3 + $0x38] sm:$0xff] }
0x1c0f   :  { %1230 = vmatpush.bf16.msrb.mxu0 %v1376_v16 }
0x1c6b   :  { %v1126_v42 = vpop.permute.xlu0 %1125 }
0x1c6c   :  { %v1128_v35 = vmul.f32 %v1126_v42, %v1120_v43 }
0x1c6e   :  { %1130 = vrot.lane.b32.xlu1 %v1128_v35, %s1572_s22 }
0x1ce0   :  { %v1131_v45 = vpop.permute.xlu1 %1130 }
0x1ce1   :  { %v1133_v46 = vadd.f32 %v1131_v45, %v1123_v44 }
0x1ce3   :  { %1505 = vtanh.f32 %v1133_v46 }
0x1ce9   :  { %v1506_v39 = vpop.eup %1505 }
0x1cea   :  { %1136 = vrot.lane.b32.xlu2 %v1506_v39, %s1572_s22 }
0x1d44   :  { %v1137_v47 = vpop.permute.xlu2 %1136 }
0x1d45   :  { %v1139_v48 = vmul.f32 %v1137_v47, %v1120_v43 }
0x1d47   :  { %v1140_v49 = vpack.c.bf16 %v1139_v48, %v1139_v48 }
0x1d49   :  { %1142 = vrot.lane.b32.xlu0 %v1140_v49, %s1569_s17 }
0x1dbb   :  { %v1143_v50 = vpop.permute.xlu0 %1142 }
0x1dbc   :  { %1350 = vmatmul.msk.bf16.vlgmr.msrb.gmra.mxu2 %vm128_vm5, %v1143_v50 }
0x1e3f   :  { %v1156_v53 = vpop.f32.mrf.mxu2 }
0x1e40   :  { %v1160_v54 = vadd.f32 %v1156_v53, %v727_v52 }
0x1e42   :  { %1507 = vtanh.f32 %v1160_v54  ;;  %v1351_v57 = vmul.f32 -1.442695, %v1160_v54 }
0x1e44   :  { %1509 = vpow2.f32 %v1351_v57 }
0x1e47   :  { %v1158_v55 = vpop.f32.mrf.mxu2 }
0x1e48   :  { %v1508_v56 = vpop.eup %1507 }
0x1e49   :  { %1183 = vrot.lane.b32.xlu1 %v1508_v56, %s1572_s22 }
0x1e4a   :  { %v1510_v58 = vpop.eup %1509 }
0x1e4b   :  { %v1164_v13 = vadd.f32 1.0, %v1510_v58 }
0x1e4d   :  { %1511 = vrcp.f32 %v1164_v13  ;;  %v1176_v63 = vand.u32 2147483648, %v1164_v13  ;;  %vm1170_vm6 = vweird.f32 %v1164_v13  ;;  %v1174_v26 = vand.u32 2147483647, %v1164_v13 }
0x1e4f   :  { %v1177_v2 = vor.u32 1.1754944e-38, %v1176_v63  ;;  %vm1175_vm8 = vcmp.eq.f32.partialorder %v1174_v26, 8.507059e+37 }
0x1e53   :  { %v1512_v59 = vpop.eup %1511 }
0x1e54   :  { %v1166_v60 = vmul.f32 %v1512_v59, %v1164_v13  ;;  %vm1171_vm4 = vweird.f32 %v1512_v59 }
0x1e55   :  { %vm1172_vm7 = vmor %vm1170_vm6, %vm1171_vm4 }
0x1e56   :  { %v1167_v61 = vsub.f32 1.0, %v1166_v60 }
0x1e58   :  { %v1168_v62 = vmul.f32 %v1512_v59, %v1167_v61 }
0x1e5a   :  { %v1169_v7 = vadd.f32 %v1512_v59, %v1168_v62 }
0x1e5c   :  { %v1173_v0 = vsel %vm1172_vm7, %v1512_v59, %v1169_v7 }
0x1e5d   :  { %v1178_v9 = vsel %vm1175_vm8, %v1177_v2, %v1173_v0 }
0x1e5e   :  { %v1181_v33 = vmul.f32 %v1178_v9, %v1133_v46 }
0x1ebb   :  { %v1184_v8 = vpop.permute.xlu1 %1183 }
0x1ebc   :  { %v1186_v10 = vmul.f32 %v1184_v8, %v1178_v9 }
0x1ebe   :  { %1188 = vrot.lane.b32.xlu2 %v1186_v10, %s1572_s22 }
0x1f18   :  { %v1189_v11 = vpop.permute.xlu2 %1188 }
0x1f19   :  { %v1191_v12 = vadd.f32 %v1189_v11, %v1181_v33 }
0x1f1b   :  { %1513 = vtanh.f32 %v1191_v12 }
0x1f21   :  { %v1514_v14 = vpop.eup %1513 }
0x1f22   :  { %1194 = vrot.lane.b32.xlu0 %v1514_v14, %s1572_s22 }
0x1f94   :  { %v1195_v1 = vpop.permute.xlu0 %1194 }
0x1f95   :  { %v1197_v19 = vmul.f32 %v1195_v1, %v1178_v9 }
0x1f97   :  { %v1198_v20 = vpack.c.bf16 %v1197_v19, %v1197_v19 }
0x1f99   :  { %1206 = vrot.lane.b32.xlu1 %v1198_v20, %s1569_s17 }
0x200b   :  { %v1207_v21 = vpop.permute.xlu1 %1206 }
0x200c   :  { %1360 = vmatmul.msk.bf16.vlgmr.msrb.gmra.mxu0 %vm128_vm5, %v1207_v21 }
0x2089   :  { %v1232_v22 = vpop.f32.mrf.mxu0 }
0x208a   :  { %v1233_v24 = vadd.f32 %v1386_v15, %v1232_v22 }
0x208c   :  { %1236 = vst [vmem:[#allocation6] sm:$0xff] %v1233_v24 }
0x208d   :  { %1247 = dma.vmem_to_hbm [thread:$0]  %s1243_s8, 128, %s1245_s11, [#allocation5]  }
0x2091   :  { %v1234_v25 = vpop.f32.mrf.mxu0 }
0x2092   :  { %1566 = dma.done.wait [#allocation5], 128  }
0x2093   :  { %1567 = vsyncadd [#allocation5], 4294967168 }
0x2094   :  { %1252 = vsyncpa [#allocation4], 1 }
0x2095   :  { %1253 = vsyncpa [#allocation5], 1 }

</bundles_post_ra>
